<compile_context>
chip_gen: v5e
topology: v5e:2x2
jax: 0.10.0
libtpu: 0.0.40
codegen_flags: <defaults>
</compile_context>

<pallas_src>
import functools

import jax
import jax.numpy as jnp
import numpy as np
from jax.experimental import pallas as pl
from jax.experimental.pallas import tpu as pltpu


def _round_up(x, m):
    return ((x + m - 1) // m) * m


def self_attention_kernel(*refs, n_head, c, gating):
    if gating:
        x_ref, mb_ref, w_ref, gb_ref, wo_ref, bo_ref, o_ref = refs
    else:
        x_ref, mb_ref, w_ref, wo_ref, bo_ref, o_ref = refs
        gb_ref = None

    bt, L, d = x_ref.shape
    hc = n_head * c

    # Activations travel HBM as f32 (no wrapper cast pass); cast to bf16 on the VPU here.
    x2 = x_ref[...].reshape(bt * L, d).astype(jnp.bfloat16)

    # ---- fused QKV (+ gate) projection: ONE bf16 MXU matmul, f32 accumulation.
    # q columns of the fused weight were pre-scaled by c**-0.5 on the host.
    proj = jnp.dot(x2, w_ref[...], preferred_element_type=jnp.float32)   # [bt*L, (3|4)*hc]
    proj3 = proj.reshape(bt, L, -1)

    # ---- regroup heads onto a single leading batch dim: [n_head*bt, L, c], n = h*bt + b.
    # TODO(synk): replace the c-wide lane slices + concat with a single pltpu.einshape once
    #             the grouped-axis equation form is verified to lower inside kernels.
    def gather_heads(base):
        parts = [proj3[:, :, base + h * c: base + (h + 1) * c] for h in range(n_head)]
        return jnp.concatenate(parts, axis=0).astype(jnp.bfloat16)

    qh = gather_heads(0 * hc)
    kh = gather_heads(1 * hc)
    vh = gather_heads(2 * hc)

    # ---- head-batched attention (single leading batch dim) ----
    logits = jnp.einsum("nqc,nkc->nqk", qh, kh,
                        preferred_element_type=jnp.float32)              # [n*bt, L, L] f32

    # Precomputed (mask-1)*1e9 bias: broadcast over heads via a free leading-dim view
    # (no tiled n_head copies of the bias).
    logits = (logits.reshape(n_head, bt, L, L) + mb_ref[...]).reshape(n_head * bt, L, L)

    m = jnp.max(logits, axis=-1, keepdims=True)
    p = jnp.exp(logits - m)
    denom = jnp.sum(p, axis=-1, keepdims=True)

    # Deferred softmax normalization: unnormalized PV matmul, then scale the [.., L, c]
    # result by 1/denom (EUP reciprocal, off the VALU).
    wa = jnp.einsum("nqk,nkc->nqc", p.astype(jnp.bfloat16), vh,
                    preferred_element_type=jnp.float32)                  # [n*bt, L, c] f32
    wa = wa * pl.reciprocal(denom, approx=True)

    # ---- back to [bt*L, hc]: per-head leading-dim slices, concat along lanes ----
    weighted = jnp.concatenate(
        [wa[h * bt:(h + 1) * bt] for h in range(n_head)], axis=-1).reshape(bt * L, hc)

    if gating:
        gate = jax.nn.sigmoid(proj[:, 3 * hc:] + gb_ref[...])            # [bt*L, hc] f32
        weighted = weighted * gate

    # ---- output projection into lane-dense (128-padded) columns, bf16 writeback ----
    out = jnp.dot(weighted.astype(jnp.bfloat16), wo_ref[...],
                  preferred_element_type=jnp.float32)                    # [bt*L, out_p] f32
    out = out + bo_ref[...]
    o_ref[...] = out.reshape(bt, L, -1).astype(o_ref.dtype)


def prepare_params(params, *, n_head, c, gating=True):
    """One-time host-side parameter transform (call ONCE, not per forward pass):
       folds q-scaling into wqkv, fuses the gate projection into the QKV weight,
       pads W_o / b_o to a lane-dense (multiple-of-128) width, pre-casts to bf16."""
    hc = n_head * c
    wqkv = jnp.asarray(params["wqkv"], jnp.float32)
    wqkv = wqkv.at[:, :hc].multiply(c ** (-0.5))                 # fold q scaling into weight
    if gating:
        w_fused = jnp.concatenate([wqkv, jnp.asarray(params["wg"], jnp.float32)], axis=1)
    else:
        w_fused = wqkv
    out_dim = params["wo"].shape[1]
    out_p = _round_up(out_dim, 128)
    wo = jnp.pad(jnp.asarray(params["wo"], jnp.float32), ((0, 0), (0, out_p - out_dim)))
    bo = jnp.pad(jnp.asarray(params["bo"], jnp.float32), ((0, 0), (0, out_p - out_dim)))
    prepped = {
        "w_fused": w_fused.astype(jnp.bfloat16),
        "wo": wo.astype(jnp.bfloat16),
        "bo": bo,                                                # f32 bias (added post-acc)
        "out_dim": out_dim,
        "out_p": out_p,
    }
    if gating:
        prepped["gb"] = jnp.asarray(params["gb"], jnp.float32).reshape(1, hc)
    return prepped


def _tpu_tuning():
    kind = ""
    try:
        kind = (getattr(jax.devices()[0], "device_kind", "") or "").lower()
    except Exception:
        pass
    two_cores = "v7" in kind
    if two_cores:
        vmem_limit = 48 * 1024 * 1024      # v7x: 64 MiB physical VMEM per TensorCore
    elif ("v5" in kind) or ("v6" in kind):
        vmem_limit = 100 * 1024 * 1024     # v5e/v6e: 128 MiB physical; allow bigger tiles
    else:
        vmem_limit = 32 * 1024 * 1024
    return two_cores, vmem_limit


def self_attention(in_data, mask, prepped, *, n_head, c, gating=True, bt=None):
    """in_data: [b1, b2, L, qkv_dim] f32; mask: [b1, b2, L] (1.0 keep / 0.0 masked).
       `prepped` must come from prepare_params()."""
    b1, b2, L, qkv_dim = in_data.shape
    B = b1 * b2
    hc = n_head * c
    out_dim, out_p = prepped["out_dim"], prepped["out_p"]
    w_fused, wo, bo = prepped["w_fused"], prepped["wo"], prepped["bo"]
    wcols = w_fused.shape[1]

    two_cores, vmem_limit = _tpu_tuning()

    if bt is None:
        # Rough per-item VMEM footprint: attention intermediates + projections + I/O blocks.
        per_item = (n_head * L * L * (4 + 4 + 2)           # logits f32, p f32, p bf16
                    + L * wcols * (4 + 2)                  # fused projection f32/bf16
                    + 3 * L * hc * (4 + 2)                 # q/k/v head temporaries
                    + 2 * L * (qkv_dim * 4 + out_p * 2))   # double-buffered x / out blocks
        bt_cap = max(1, int((vmem_limit // 2) // max(per_item, 1)))
        if two_cores and B >= 2:
            bt = min(bt_cap, max(1, B // 2))   # keep >= 2 grid steps so both v7x TCs get work
        else:
            bt = min(bt_cap, B)                # 1 TC/chip: grid is serial, take one big step
    bt = max(1, min(bt, B))
    nb = -(-B // bt)                           # cdiv
    Bp = nb * bt

    x = in_data.reshape(B, L, qkv_dim)                                    # f32; cast in-kernel
    mb = (mask.reshape(B, 1, L).astype(jnp.float32) - 1.0) * 1e9          # 0 keep / -1e9 masked
    if Bp > B:                                                            # padded rows sliced off
        x = jnp.pad(x, ((0, Bp - B), (0, 0), (0, 0)))
        mb = jnp.pad(mb, ((0, Bp - B), (0, 0), (0, 0)))

    kernel = functools.partial(self_attention_kernel, n_head=n_head, c=c, gating=gating)

    def run(single_buffer_weights):
        def const_spec(shape):
            kw = {}
            if single_buffer_weights:
                kw["pipeline_mode"] = pl.Buffered(1)        # constant block index: 1 buffer
            zeros = (0,) * len(shape)
            return pl.BlockSpec(shape, lambda b, _z=zeros: _z, **kw)

        in_specs = [
            pl.BlockSpec((bt, L, qkv_dim), lambda b: (b, 0, 0)),   # activations (f32)
            pl.BlockSpec((bt, 1, L), lambda b: (b, 0, 0)),         # mask bias (f32)
            const_spec((qkv_dim, wcols)),                          # fused W_qkv|W_gate (bf16)
        ]
        args = [x, mb, w_fused]
        if gating:
            in_specs.append(const_spec((1, hc)))                   # gating bias
            args.append(prepped["gb"])
        in_specs += [const_spec((hc, out_p)),                      # W_o (padded, bf16)
                     const_spec((1, out_p))]                       # b_o (padded, f32)
        args += [wo, bo]

        return pl.pallas_call(
            kernel,
            out_shape=jax.ShapeDtypeStruct((Bp, L, out_p), jnp.bfloat16),
            grid_spec=pltpu.PrefetchScalarGridSpec(
                num_scalar_prefetch=0,
                grid=(nb,),
                in_specs=in_specs,
                out_specs=pl.BlockSpec((bt, L, out_p), lambda b: (b, 0, 0)),
            ),
            compiler_params=pltpu.CompilerParams(
                dimension_semantics=("parallel",),
                vmem_limit_bytes=vmem_limit,
            ),
        )(*args)

    if nb > 1:
        # Weights never change block index -> single-buffer them; fall back cleanly if this
        # jax build does not lower BlockSpec(pipeline_mode=pl.Buffered(1)) on TPU.
        try:
            out = run(True)
        except Exception:
            out = run(False)
    else:
        out = run(False)

    # TODO(synk): if the consumer accepts the 128-padded out_dim (bf16), return `out`
    #             directly and skip this extra slice pass over the result.
    return out[:B, :, :out_dim].reshape(b1, b2, L, out_dim)


def ref_self_attention(in_data, mask, params, *, n_head, c, gating=True):
    """Pure-JAX f32 reference matching the PyTorch forward semantics."""
    scaling = c ** (-0.5)
    hc = n_head * c
    b1, b2, L, _ = in_data.shape

    qkv = jnp.einsum("...id,do->...io", in_data, params["wqkv"])
    q, k, v = jnp.split(qkv, 3, axis=-1)

    def to_heads(t):  # 'b1 b2 n (h d) -> b1 b2 h n d'
        return t.reshape(b1, b2, L, n_head, c).transpose(0, 1, 3, 2, 4)

    q = to_heads(q) * scaling
    k = to_heads(k)
    v = to_heads(v)

    logits = jnp.einsum("...qd,...kd->...qk", q, k)
    mask_bias = (mask.astype(jnp.float32) - 1.0) * 1e9            # [b1,b2,L]
    logits = logits + mask_bias[:, :, None, None, :]
    w = jax.nn.softmax(logits, axis=-1)
    wa = jnp.einsum("...qk,...kd->...qd", w, v)
    wa = wa.transpose(0, 1, 3, 2, 4).reshape(b1, b2, L, hc)

    if gating:
        gate = jax.nn.sigmoid(
            jnp.einsum("...id,do->...io", in_data, params["wg"]) + params["gb"][0]
        )
        wa = wa * gate
    return jnp.einsum("...id,do->...io", wa, params["wo"]) + params["bo"][0]


if __name__ == "__main__":
    # Module hyper-parameters (small, consistent with the forward pass).
    b1, b2, L = 2, 3, 8
    qkv_dim, c, n_head, out_dim = 32, 8, 4, 32
    hc = n_head * c

    key = jax.random.PRNGKey(0)
    k_x, k_m, k_qkv, k_g, k_o, k_bo = jax.random.split(key, 6)

    in_data = jax.random.normal(k_x, (b1, b2, L, qkv_dim), dtype=jnp.float32)
    mask = (jax.random.uniform(k_m, (b1, b2, L)) > 0.3).astype(jnp.float32)

    # Deterministic synthetic parameters; weights stored pre-transposed [in, out].
    params = {
        "wqkv": jax.random.normal(k_qkv, (qkv_dim, 3 * hc), dtype=jnp.float32) * 0.1,
        "wg": jax.random.normal(k_g, (qkv_dim, hc), dtype=jnp.float32) * 0.1,
        "gb": jnp.ones((1, hc), dtype=jnp.float32),                # gating_bias init = 1
        "wo": jax.random.normal(k_o, (hc, out_dim), dtype=jnp.float32) * 0.1,
        "bo": jax.random.normal(k_bo, (1, out_dim), dtype=jnp.float32) * 0.1,
    }

    prepped = prepare_params(params, n_head=n_head, c=c, gating=True)   # one-time transform
    out = self_attention(in_data, mask, prepped, n_head=n_head, c=c, gating=True)
    out = jax.block_until_ready(out)

    ref = ref_self_attention(in_data, mask, params, n_head=n_head, c=c, gating=True)
    # bf16 matmul operands + bf16 output (f32 accumulation) vs f32 reference -> 2e-2 tol.
    np.testing.assert_allclose(np.asarray(out, dtype=np.float32), np.asarray(ref),
                               rtol=2e-2, atol=2e-2)

    print("KERNEL_OK")
</pallas_src>

<mosaic_0001>
module attributes {stable_mosaic.version = 11 : i64} {
  func.func @self_attention_kernel(%arg0: i32, %arg1: memref<6x8x32xf32, #tpu.memory_space<vmem>>, %arg2: memref<6x1x8xf32, #tpu.memory_space<vmem>>, %arg3: memref<32x128xbf16, #tpu.memory_space<vmem>>, %arg4: memref<1x32xf32, #tpu.memory_space<vmem>>, %arg5: memref<32x128xbf16, #tpu.memory_space<vmem>>, %arg6: memref<1x128xf32, #tpu.memory_space<vmem>>, %arg7: memref<6x8x128xbf16, #tpu.memory_space<vmem>>) attributes {dimension_semantics = [#tpu.dimension_semantics<parallel>], iteration_bounds = array<i64: 1>, scalar_prefetch = 0 : i64, scratch_operands = 0 : i64, tpu.core_type = #tpu.core_type<tc>, window_params = [{transform_indices = @transform_0, window_bounds = array<i64: 6, 8, 32>}, {transform_indices = @transform_1, window_bounds = array<i64: 6, 1, 8>}, {pipeline_mode = #tpu.pipeline_mode<synchronous>, transform_indices = @transform_2, window_bounds = array<i64: 32, 128>}, {pipeline_mode = #tpu.pipeline_mode<synchronous>, transform_indices = @transform_3, window_bounds = array<i64: 1, 32>}, {pipeline_mode = #tpu.pipeline_mode<synchronous>, transform_indices = @transform_4, window_bounds = array<i64: 32, 128>}, {pipeline_mode = #tpu.pipeline_mode<synchronous>, transform_indices = @transform_5, window_bounds = array<i64: 1, 128>}, {transform_indices = @transform_6, window_bounds = array<i64: 6, 8, 128>}]} {
    %c0 = arith.constant 0 : index
    %c0_0 = arith.constant 0 : index
    %c0_1 = arith.constant 0 : index
    %0 = vector.load %arg1[%c0, %c0_0, %c0_1] : memref<6x8x32xf32, #tpu.memory_space<vmem>>, vector<6x8x32xf32>
    %1 = vector.shape_cast %0 : vector<6x8x32xf32> to vector<48x32xf32>
    %2 = arith.truncf %1 : vector<48x32xf32> to vector<48x32xbf16>
    %c0_2 = arith.constant 0 : index
    %c0_3 = arith.constant 0 : index
    %3 = vector.load %arg3[%c0_2, %c0_3] : memref<32x128xbf16, #tpu.memory_space<vmem>>, vector<32x128xbf16>
    %cst = arith.constant dense<0.000000e+00> : vector<48x128xf32>
    %4 = tpu.matmul %2, %3, %cst {dimension_numbers = #tpu.dot_dimension_numbers<[1], [0], [0], [1], [0, 0, 1, 1], [], []>} : vector<48x32xbf16>, vector<32x128xbf16>, vector<48x128xf32> -> vector<48x128xf32>
    %5 = vector.shape_cast %4 : vector<48x128xf32> to vector<6x8x128xf32>
    %6 = vector.extract_strided_slice %5 {offsets = [0, 0, 0], sizes = [6, 8, 8], strides = [1, 1, 1]} : vector<6x8x128xf32> to vector<6x8x8xf32>
    %7 = vector.extract_strided_slice %5 {offsets = [0, 0, 8], sizes = [6, 8, 8], strides = [1, 1, 1]} : vector<6x8x128xf32> to vector<6x8x8xf32>
    %8 = vector.extract_strided_slice %5 {offsets = [0, 0, 16], sizes = [6, 8, 8], strides = [1, 1, 1]} : vector<6x8x128xf32> to vector<6x8x8xf32>
    %9 = vector.extract_strided_slice %5 {offsets = [0, 0, 24], sizes = [6, 8, 8], strides = [1, 1, 1]} : vector<6x8x128xf32> to vector<6x8x8xf32>
    %10 = tpu.concatenate %6, %7, %8, %9 in 0 : vector<6x8x8xf32>, vector<6x8x8xf32>, vector<6x8x8xf32>, vector<6x8x8xf32> -> vector<24x8x8xf32>
    %11 = arith.truncf %10 : vector<24x8x8xf32> to vector<24x8x8xbf16>
    %12 = vector.extract_strided_slice %5 {offsets = [0, 0, 32], sizes = [6, 8, 8], strides = [1, 1, 1]} : vector<6x8x128xf32> to vector<6x8x8xf32>
    %13 = vector.extract_strided_slice %5 {offsets = [0, 0, 40], sizes = [6, 8, 8], strides = [1, 1, 1]} : vector<6x8x128xf32> to vector<6x8x8xf32>
    %14 = vector.extract_strided_slice %5 {offsets = [0, 0, 48], sizes = [6, 8, 8], strides = [1, 1, 1]} : vector<6x8x128xf32> to vector<6x8x8xf32>
    %15 = vector.extract_strided_slice %5 {offsets = [0, 0, 56], sizes = [6, 8, 8], strides = [1, 1, 1]} : vector<6x8x128xf32> to vector<6x8x8xf32>
    %16 = tpu.concatenate %12, %13, %14, %15 in 0 : vector<6x8x8xf32>, vector<6x8x8xf32>, vector<6x8x8xf32>, vector<6x8x8xf32> -> vector<24x8x8xf32>
    %17 = arith.truncf %16 : vector<24x8x8xf32> to vector<24x8x8xbf16>
    %18 = vector.extract_strided_slice %5 {offsets = [0, 0, 64], sizes = [6, 8, 8], strides = [1, 1, 1]} : vector<6x8x128xf32> to vector<6x8x8xf32>
    %19 = vector.extract_strided_slice %5 {offsets = [0, 0, 72], sizes = [6, 8, 8], strides = [1, 1, 1]} : vector<6x8x128xf32> to vector<6x8x8xf32>
    %20 = vector.extract_strided_slice %5 {offsets = [0, 0, 80], sizes = [6, 8, 8], strides = [1, 1, 1]} : vector<6x8x128xf32> to vector<6x8x8xf32>
    %21 = vector.extract_strided_slice %5 {offsets = [0, 0, 88], sizes = [6, 8, 8], strides = [1, 1, 1]} : vector<6x8x128xf32> to vector<6x8x8xf32>
    %22 = tpu.concatenate %18, %19, %20, %21 in 0 : vector<6x8x8xf32>, vector<6x8x8xf32>, vector<6x8x8xf32>, vector<6x8x8xf32> -> vector<24x8x8xf32>
    %23 = arith.truncf %22 : vector<24x8x8xf32> to vector<24x8x8xbf16>
    "tpu.trace_start"() <{level = 10 : i32, message = "nqc,nkc->nqk"}> : () -> ()
    %cst_4 = arith.constant dense<0.000000e+00> : vector<24x8x8xf32>
    %24 = tpu.matmul %11, %17, %cst_4 {dimension_numbers = #tpu.dot_dimension_numbers<[2], [2], [1], [1], [0, 0, 0, 1, 1, 1], [0], [0]>} : vector<24x8x8xbf16>, vector<24x8x8xbf16>, vector<24x8x8xf32> -> vector<24x8x8xf32>
    "tpu.trace_stop"() : () -> ()
    %25 = vector.shape_cast %24 : vector<24x8x8xf32> to vector<4x6x8x8xf32>
    %c0_5 = arith.constant 0 : index
    %c0_6 = arith.constant 0 : index
    %c0_7 = arith.constant 0 : index
    %26 = vector.load %arg2[%c0_5, %c0_6, %c0_7] : memref<6x1x8xf32, #tpu.memory_space<vmem>>, vector<6x1x8xf32>
    %27 = vector.shape_cast %26 : vector<6x1x8xf32> to vector<1x6x1x8xf32>
    %28 = vector.broadcast %27 : vector<1x6x1x8xf32> to vector<4x6x8x8xf32>
    %29 = arith.addf %25, %28 : vector<4x6x8x8xf32>
    %30 = vector.shape_cast %29 : vector<4x6x8x8xf32> to vector<24x8x8xf32>
    %cst_8 = arith.constant dense<0xFF800000> : vector<24x8xf32>
    %31 = vector.multi_reduction <maximumf>, %30, %cst_8 [2] : vector<24x8x8xf32> to vector<24x8xf32>
    %32 = vector.shape_cast %31 : vector<24x8xf32> to vector<24x8x1xf32>
    %33 = vector.broadcast %32 : vector<24x8x1xf32> to vector<24x8x8xf32>
    %34 = arith.subf %30, %33 : vector<24x8x8xf32>
    %35 = math.exp %34 : vector<24x8x8xf32>
    %cst_9 = arith.constant dense<0.000000e+00> : vector<24x8xf32>
    %36 = vector.multi_reduction <add>, %35, %cst_9 [2] : vector<24x8x8xf32> to vector<24x8xf32>
    %37 = vector.shape_cast %36 : vector<24x8xf32> to vector<24x8x1xf32>
    %38 = arith.truncf %35 : vector<24x8x8xf32> to vector<24x8x8xbf16>
    "tpu.trace_start"() <{level = 10 : i32, message = "nqk,nkc->nqc"}> : () -> ()
    %cst_10 = arith.constant dense<0.000000e+00> : vector<24x8x8xf32>
    %39 = tpu.matmul %38, %23, %cst_10 {dimension_numbers = #tpu.dot_dimension_numbers<[2], [1], [1], [2], [0, 0, 0, 1, 1, 2], [0], [0]>} : vector<24x8x8xbf16>, vector<24x8x8xbf16>, vector<24x8x8xf32> -> vector<24x8x8xf32>
    "tpu.trace_stop"() : () -> ()
    %40 = tpu.reciprocal %37 {approx = true} : vector<24x8x1xf32> -> vector<24x8x1xf32>
    %41 = vector.broadcast %40 : vector<24x8x1xf32> to vector<24x8x8xf32>
    %42 = arith.mulf %39, %41 : vector<24x8x8xf32>
    %43 = vector.extract_strided_slice %42 {offsets = [0, 0, 0], sizes = [6, 8, 8], strides = [1, 1, 1]} : vector<24x8x8xf32> to vector<6x8x8xf32>
    %44 = vector.extract_strided_slice %42 {offsets = [6, 0, 0], sizes = [6, 8, 8], strides = [1, 1, 1]} : vector<24x8x8xf32> to vector<6x8x8xf32>
    %45 = vector.extract_strided_slice %42 {offsets = [12, 0, 0], sizes = [6, 8, 8], strides = [1, 1, 1]} : vector<24x8x8xf32> to vector<6x8x8xf32>
    %46 = vector.extract_strided_slice %42 {offsets = [18, 0, 0], sizes = [6, 8, 8], strides = [1, 1, 1]} : vector<24x8x8xf32> to vector<6x8x8xf32>
    %47 = tpu.concatenate %43, %44, %45, %46 in 2 : vector<6x8x8xf32>, vector<6x8x8xf32>, vector<6x8x8xf32>, vector<6x8x8xf32> -> vector<6x8x32xf32>
    %48 = vector.shape_cast %47 : vector<6x8x32xf32> to vector<48x32xf32>
    %49 = vector.extract_strided_slice %4 {offsets = [0, 96], sizes = [48, 32], strides = [1, 1]} : vector<48x128xf32> to vector<48x32xf32>
    %c0_11 = arith.constant 0 : index
    %c0_12 = arith.constant 0 : index
    %50 = vector.load %arg4[%c0_11, %c0_12] : memref<1x32xf32, #tpu.memory_space<vmem>>, vector<1x32xf32>
    %51 = vector.broadcast %50 : vector<1x32xf32> to vector<48x32xf32>
    %52 = arith.addf %49, %51 : vector<48x32xf32>
    %53 = arith.negf %52 : vector<48x32xf32>
    %54 = math.exp %53 : vector<48x32xf32>
    %cst_13 = arith.constant 1.000000e+00 : f32
    %55 = vector.broadcast %cst_13 : f32 to vector<48x32xf32>
    %56 = arith.addf %55, %54 : vector<48x32xf32>
    %57 = arith.divf %55, %56 : vector<48x32xf32>
    %58 = arith.mulf %48, %57 : vector<48x32xf32>
    %59 = arith.truncf %58 : vector<48x32xf32> to vector<48x32xbf16>
    %c0_14 = arith.constant 0 : index
    %c0_15 = arith.constant 0 : index
    %60 = vector.load %arg5[%c0_14, %c0_15] : memref<32x128xbf16, #tpu.memory_space<vmem>>, vector<32x128xbf16>
    %cst_16 = arith.constant dense<0.000000e+00> : vector<48x128xf32>
    %61 = tpu.matmul %59, %60, %cst_16 {dimension_numbers = #tpu.dot_dimension_numbers<[1], [0], [0], [1], [0, 0, 1, 1], [], []>} : vector<48x32xbf16>, vector<32x128xbf16>, vector<48x128xf32> -> vector<48x128xf32>
    %c0_17 = arith.constant 0 : index
    %c0_18 = arith.constant 0 : index
    %62 = vector.load %arg6[%c0_17, %c0_18] : memref<1x128xf32, #tpu.memory_space<vmem>>, vector<1x128xf32>
    %63 = vector.broadcast %62 : vector<1x128xf32> to vector<48x128xf32>
    %64 = arith.addf %61, %63 : vector<48x128xf32>
    %65 = vector.shape_cast %64 : vector<48x128xf32> to vector<6x8x128xf32>
    %66 = arith.truncf %65 : vector<6x8x128xf32> to vector<6x8x128xbf16>
    %c0_19 = arith.constant 0 : index
    %c0_20 = arith.constant 0 : index
    %c0_21 = arith.constant 0 : index
    %67 = vector.load %arg7[%c0_19, %c0_20, %c0_21] : memref<6x8x128xbf16, #tpu.memory_space<vmem>>, vector<6x8x128xbf16>
    tpu.vector_store %arg7[%c0_19, %c0_20, %c0_21], %66 {strides = array<i32>} : memref<6x8x128xbf16, #tpu.memory_space<vmem>>, vector<6x8x128xbf16>,
    return
  }
  func.func @transform_0(%arg0: i32) -> (i32, i32, i32) {
    %c0_i32 = arith.constant 0 : i32
    %c0_i32_0 = arith.constant 0 : i32
    %c0_i32_1 = arith.constant 0 : i32
    return %arg0, %c0_i32, %c0_i32_0 : i32, i32, i32
  }
  func.func @transform_1(%arg0: i32) -> (i32, i32, i32) {
    %c0_i32 = arith.constant 0 : i32
    %c0_i32_0 = arith.constant 0 : i32
    %c0_i32_1 = arith.constant 0 : i32
    return %arg0, %c0_i32, %c0_i32_0 : i32, i32, i32
  }
  func.func @transform_2(%arg0: i32) -> (i32, i32) {
    %c0_i32 = arith.constant 0 : i32
    %c0_i32_0 = arith.constant 0 : i32
    %c0_i32_1 = arith.constant 0 : i32
    return %c0_i32, %c0_i32_0 : i32, i32
  }
  func.func @transform_3(%arg0: i32) -> (i32, i32) {
    %c0_i32 = arith.constant 0 : i32
    %c0_i32_0 = arith.constant 0 : i32
    %c0_i32_1 = arith.constant 0 : i32
    return %c0_i32, %c0_i32_0 : i32, i32
  }
  func.func @transform_4(%arg0: i32) -> (i32, i32) {
    %c0_i32 = arith.constant 0 : i32
    %c0_i32_0 = arith.constant 0 : i32
    %c0_i32_1 = arith.constant 0 : i32
    return %c0_i32, %c0_i32_0 : i32, i32
  }
  func.func @transform_5(%arg0: i32) -> (i32, i32) {
    %c0_i32 = arith.constant 0 : i32
    %c0_i32_0 = arith.constant 0 : i32
    %c0_i32_1 = arith.constant 0 : i32
    return %c0_i32, %c0_i32_0 : i32, i32
  }
  func.func @transform_6(%arg0: i32) -> (i32, i32, i32) {
    %c0_i32 = arith.constant 0 : i32
    %c0_i32_0 = arith.constant 0 : i32
    %c0_i32_1 = arith.constant 0 : i32
    return %arg0, %c0_i32, %c0_i32_0 : i32, i32, i32
  }
}

</mosaic_0001>

<bundles_post_ra>
// kernel: tpu_custom_call.1
= control target key start
LH: loop header
LB: loop body
LE: loop exit
PB: predicated region body
PF: predicated region fallthrough
CT: control target
= control target key end

     0   :  { %11 = vsyncpa [#allocation3], 0  ;;  %s3347_s0 = inlined_call_operand.hbm [shape: f32[6,8,32], index: 0, kind: input, shape index: {}]   ;;  %s3348_s1 = inlined_call_operand.hbm [shape: f32[6,1,8], index: 1, kind: input, shape index: {}]   ;;  %s3349_s2 = inlined_call_operand.hbm [shape: bf16[32,128], index: 2, kind: input, shape index: {}]   ;;  %s3350_s3 = inlined_call_operand.vmem [shape: f32[1,32], index: 3, kind: input, shape index: {}]   ;;  %s3351_s4 = inlined_call_operand.hbm [shape: bf16[32,128], index: 4, kind: input, shape index: {}]   ;;  %s3352_s5 = inlined_call_operand.vmem [shape: f32[1,128], index: 5, kind: input, shape index: {}]   ;;  %s3353_s6 = inlined_call_operand.hbm [shape: bf16[6,8,128], index: 6, kind: output, shape index: {}]  }
   0x1   :  { %12 = vsyncpa [#allocation6], 0 }
   0x2   :  { %13 = vsyncpa [#allocation9], 0  ;;  %s32_s23 = sshll.u32 %s3348_s1, 4  ;;  %s33_s23 = int_to_ptr.hbm [resolvable:$true] %s32_s23 }
   0x3   :  { %14 = vsyncpa [#allocation4], 0  ;;  %s2401_s24 = smov [#allocation5]   ;;  %s19_s28 = sshll.u32 %s3347_s0, 4  ;;  %s20_s28 = int_to_ptr.hbm [resolvable:$true] %s19_s28 }
   0x4   :  { %s34_s25 = sshll.u32 %s2401_s24, 4  ;;  %s2402_s29 = smov 16   ;;  %s35_s25 = int_to_ptr.vmem [resolvable:$true] %s34_s25 }
   0x5   :  { %s2403_s30 = smov 1   ;;  %s2404_s7 = smov [#allocation2]  }
   0x6   :  { %40 = dma.hbm_to_vmem [thread:$0]  %s33_s23, 96, %s35_s25, [#allocation6], %s2402_s29, %s2402_s29, %s2403_s30  }
   0x7   :  { %s21_s8 = sshll.u32 %s2404_s7, 4  ;;  %s2405_s9 = smov 128   ;;  %s22_s8 = int_to_ptr.vmem [resolvable:$true] %s21_s8 }
   0x8   :  { %s2406_s1 = smov 8   ;;  %s45_s12 = sshll.u32 %s3349_s2, 4  ;;  %s46_s12 = int_to_ptr.hbm [resolvable:$true] %s45_s12 }
   0x9   :  { %27 = dma.hbm_to_vmem [thread:$0]  %s20_s28, 768, %s22_s8, [#allocation3], %s2405_s9, %s2405_s9, %s2406_s1  }
   0xa   :  { %s2407_s13 = smov [#allocation7]   ;;  %s60_s16 = sshll.u32 %s3351_s4, 4  ;;  %s61_s16 = int_to_ptr.hbm [resolvable:$true] %s60_s16 }
   0xb   :  { %s47_s0 = sshll.u32 %s2407_s13, 4  ;;  %s2408_s17 = smov 64   ;;  %s48_s0 = int_to_ptr.vmem [resolvable:$true] %s47_s0 }
   0xc   :  { %s2409_s18 = smov 4   ;;  %s2410_s19 = smov [#allocation8]  }
   0xd   :  { %53 = dma.hbm_to_vmem [thread:$0]  %s46_s12, 256, %s48_s0, [#allocation6], %s2408_s17, %s2408_s17, %s2409_s18  }
   0xe   :  { %s62_s20 = sshll.u32 %s2410_s19, 4  ;;  %s63_s20 = int_to_ptr.vmem [resolvable:$true] %s62_s20 }
   0xf   :  { %68 = dma.hbm_to_vmem [thread:$0]  %s61_s16, 256, %s63_s20, [#allocation9], %s2408_s17, %s2408_s17, %s2409_s18  }
  0x10   :  { %2393 = dma.done.wait [#allocation3], 768  }
  0x11   :  { %2394 = vsyncadd [#allocation3], 4294966528 }
  0x12   :  { %2395 = dma.done.wait [#allocation6], 352  }
  0x13   :  { %2396 = vsyncadd [#allocation6], 4294966944 }
  0x14   :  { %2397 = dma.done.wait [#allocation9], 256  }
  0x15   :  { %2398 = vsyncadd [#allocation9], 4294967040  ;;  %v2063_v0 = vld [vmem:[#allocation7 + $0x8] sm:$0xff]  ;;  %v2062_v1 = vld [vmem:[#allocation7] sm:$0xff]  ;;  %vm113_vm0 = vcmask 261120   ;;  %s2411_s2 = smov 96  }
  0x16   :  { %129 = vmatpush.bf16.msra.mxu0 %v2063_v0  ;;  %v88_v2 = vld [vmem:[#allocation2] sm:$0xff]  ;;  %v89_v3 = vld [vmem:[#allocation2 + $0x8] sm:$0xff]  ;;  %v90_v5 = vld [vmem:[#allocation2 + $0x10] sm:$0xff]  ;;  %s2412_s4 = smov 120   ;;  %s2413_s21 = smov 112   ;;  %vm236_vm1 = vcmask 64512  }
  0x17   :  { %v94_v4 = vpack.c.bf16 %v89_v3, %v88_v2  ;;  %v91_v6 = vld [vmem:[#allocation2 + $0x18] sm:$0xff]  ;;  %v92_v8 = vld [vmem:[#allocation2 + $0x20] sm:$0xff]  ;;  %v93_v9 = vld [vmem:[#allocation2 + $0x28] sm:$0xff]  ;;  %s2414_s22 = smov 104   ;;  %vm1101_vm2 = vcmask 1043456   ;;  %s2416_s25 = smov 24  }
  0x18   :  { %v95_v7 = vpack.c.bf16 %v91_v6, %v90_v5  ;;  %v96_v10 = vpack.c.bf16 %v93_v9, %v92_v8  ;;  %s2417_s28 = smov [#allocation10]   ;;  %s1971_s8 = sshll.u32 %s3353_s6, 4  ;;  %s1972_s8 = int_to_ptr.hbm [resolvable:$true] %s1971_s8 }
  0x1a   :  { %130 = vmatpush.bf16.msra.mxu0 %v2062_v1 }
  0x1d   :  { %1994 = vmatmul.msk.bf16.vlgmr.msra.gmra.mxu0 %vm113_vm0, %v94_v4 }
  0x2d   :  { %1995 = vmatmul.msk.bf16.gmra.mxu0 %vm113_vm0, %v95_v7 }
  0x3d   :  { %1996 = vmatmul.msk.bf16.gmra.mxu0 %vm113_vm0, %v96_v10 }
  0x9a   :  { %v2477_v11 = vpop.f32.mrf.mxu0 }
  0x9b   :  { %v207_v12 = vpack.c.bf16 %v2477_v11, %v2477_v11 }
  0x9d   :  { %v232_v13 = vunpack.c.l.b16 %v207_v12 }
  0x9f   :  { %v2481_v14 = vpack.c.b16 %v232_v13, %v232_v13 }
  0xa1   :  { %234 = vrot.lane.b32.xlu1 %v2481_v14, %s2411_s2 }
  0xa2   :  { %v2485_v15 = vpop.f32.mrf.mxu0 }
  0xa3   :  { %v2100_v16 = vpack.i.bf16 %v2477_v11, %v2485_v15  ;;  %v2491_v17 = vpack.c.bf16 %v2485_v15, %v2485_v15 }
  0xa5   :  { %2101 = vrot.lane.b32.xlu0 %v2100_v16, %s2412_s4  ;;  %v257_v18 = vunpack.c.l.b16 %v2491_v17 }
  0xa7   :  { %v2496_v20 = vpack.c.b16 %v257_v18, %v257_v18 }
  0xaa   :  { %v2494_v19 = vpop.f32.mrf.mxu0 }
  0xab   :  { %v2115_v27 = vpack.i.bf16 %v2494_v19, %v2485_v15  ;;  %v209_v32 = vpack.c.bf16 %v2494_v19, %v2494_v19 }
  0xad   :  { %259 = vrot.lane.b32.xlu0 %v2496_v20, %s2411_s2  ;;  %v281_v36 = vunpack.c.l.b16 %v209_v32 }
  0xaf   :  { %v2536_v37 = vpack.c.b16 %v281_v36, %v281_v36 }
  0xb2   :  { %v2500_v21 = vpop.f32.mrf.mxu0 }
  0xb3   :  { %v2105_v22 = vpack.i.bf16 %v2500_v21, %v2477_v11  ;;  %v2506_v23 = vpack.c.bf16 %v2500_v21, %v2500_v21  ;;  %v2135_v5 = vpack.i.bf16 %v2500_v21, %v2494_v19 }
  0xb5   :  { %2106 = vrot.lane.b32.xlu0 %v2105_v22, %s2413_s21  ;;  %v305_v24 = vunpack.c.l.b16 %v2506_v23 }
  0xb7   :  { %v2509_v25 = vpack.c.b16 %v305_v24, %v305_v24 }
  0xb9   :  { %307 = vrot.lane.b32.xlu1 %v2509_v25, %s2411_s2 }
  0xba   :  { %v2513_v26 = vpop.f32.mrf.mxu0 }
  0xbb   :  { %v2110_v28 = vpack.i.bf16 %v2513_v26, %v2500_v21  ;;  %v2521_v29 = vpack.c.bf16 %v2513_v26, %v2513_v26 }
  0xbd   :  { %2116 = vrot.lane.b32.xlu0 %v2115_v27, %s2413_s21  ;;  %2111 = vrot.lane.b32.xlu2 %v2110_v28, %s2412_s4  ;;  %v329_v30 = vunpack.c.l.b16 %v2521_v29 }
  0xbf   :  { %v2524_v31 = vpack.c.b16 %v329_v30, %v329_v30 }
  0xc2   :  { %v2528_v33 = vpop.f32.mrf.mxu0 }
  0xc3   :  { %v2125_v34 = vpack.i.bf16 %v2528_v33, %v2513_v26  ;;  %v2120_v35 = vpack.i.bf16 %v2528_v33, %v2494_v19  ;;  %v2540_v38 = vpack.c.bf16 %v2528_v33, %v2528_v33  ;;  %v2140_v41 = vpack.i.bf16 %v2513_v26, %v2528_v33 }
  0xc5   :  { %331 = vrot.lane.b32.xlu2 %v2524_v31, %s2411_s2  ;;  %2126 = vrot.lane.b32.xlu0 %v2125_v34, %s2413_s21  ;;  %v353_v39 = vunpack.c.l.b16 %v2540_v38 }
  0xc6   :  { %2121 = vrot.lane.b32.xlu1 %v2120_v35, %s2412_s4 }
  0xc7   :  { %v2546_v40 = vpack.c.b16 %v353_v39, %v353_v39 }
  0xcd   :  { %283 = vrot.lane.b32.xlu2 %v2536_v37, %s2411_s2 }
  0xce   :  { %2131 = vrot.lane.b32.xlu1 %v2100_v16, %s2414_s22 }
  0xd6   :  { %355 = vrot.lane.b32.xlu1 %v2546_v40, %s2411_s2 }
  0xde   :  { %2141 = vrot.lane.b32.xlu1 %v2140_v41, %s2414_s22 }
 0x113   :  { %v235_v42 = vpop.permute.xlu1 %234 }
 0x114   :  { %v241_v43 = vsel %vm236_vm1, %v235_v42, 0 }
 0x115   :  { %250 = vmatpush.bf16.xpose.msra.mxu1 %v241_v43 }
 0x117   :  { %v2102_v44 = vpop.permute.xlu0 %2101  ;;  %v2112_v45 = vpop.permute.xlu2 %2111 }
 0x118   :  { %v2103_v46 = vunpack.i.l.bf16 %v2102_v44  ;;  %v2114_v47 = vunpack.i.h.bf16 %v2112_v45  ;;  %v2104_v48 = vunpack.i.h.bf16 %v2102_v44  ;;  %v2113_v24 = vunpack.i.l.bf16 %v2112_v45 }
 0x11a   :  { %v2554_v49 = vpack.c.bf16 %v2103_v46, %v2103_v46  ;;  %v2556_v50 = vpack.c.bf16 %v2114_v47, %v2114_v47  ;;  %v2561_v53 = vpack.c.bf16 %v2104_v48, %v2104_v48  ;;  %v2613_v36 = vpack.c.bf16 %v2113_v24, %v2113_v24 }
 0x11c   :  { %v401_v51 = vunpack.c.l.b16 %v2554_v49  ;;  %v473_v52 = vunpack.c.l.b16 %v2556_v50  ;;  %1997 = vmatmul.msk.bf16.vlgmr.msra.gmra.mxu1 %vm236_vm1, %v207_v12  ;;  %v377_v60 = vunpack.c.l.b16 %v2561_v53  ;;  %v449_v44 = vunpack.c.l.b16 %v2613_v36 }
 0x11e   :  { %v2563_v54 = vpack.c.b16 %v401_v51, %v401_v51  ;;  %v2565_v55 = vpack.c.b16 %v473_v52, %v473_v52  ;;  %v2574_v61 = vpack.c.b16 %v377_v60, %v377_v60 }
 0x11f   :  { %v260_v56 = vpop.permute.xlu0 %259  ;;  %v332_v57 = vpop.permute.xlu2 %331 }
 0x120   :  { %403 = vrot.lane.b32.xlu2 %v2563_v54, %s2411_s2  ;;  %475 = vrot.lane.b32.xlu1 %v2565_v55, %s2411_s2  ;;  %v265_v58 = vsel %vm236_vm1, %v260_v56, 0  ;;  %v337_v59 = vsel %vm236_vm1, %v332_v57, 0  ;;  %v2635_v57 = vpack.c.b16 %v449_v44, %v449_v44 }
 0x121   :  { %274 = vmatpush.bf16.xpose.msra.mxu2 %v265_v58 }
 0x127   :  { %v2107_v62 = vpop.permute.xlu0 %2106  ;;  %v284_v63 = vpop.permute.xlu2 %283 }
 0x128   :  { %1998 = vmatmul.msk.bf16.vlgmr.msra.gmra.mxu2 %vm236_vm1, %v2491_v17  ;;  %379 = vrot.lane.b32.xlu2 %v2574_v61, %s2411_s2  ;;  %v289_v0 = vsel %vm236_vm1, %v284_v63, 0  ;;  %v2108_v1 = vunpack.i.l.bf16 %v2107_v62  ;;  %v2109_v45 = vunpack.i.h.bf16 %v2107_v62 }
 0x129   :  { %346 = vmatpush.bf16.xpose.msrb.mxu2 %v337_v59  ;;  %298 = vmatpush.bf16.xpose.msrb.mxu0 %v289_v0 }
 0x12a   :  { %v2582_v4 = vpack.c.bf16 %v2108_v1, %v2108_v1  ;;  %v2631_v52 = vpack.c.bf16 %v2109_v45, %v2109_v45 }
 0x12b   :  { %v308_v2 = vpop.permute.xlu1 %307 }
 0x12c   :  { %v313_v3 = vsel %vm236_vm1, %v308_v2, 0  ;;  %v521_v7 = vunpack.c.l.b16 %v2582_v4  ;;  %v593_v62 = vunpack.c.l.b16 %v2631_v52 }
 0x12d   :  { %322 = vmatpush.bf16.xpose.msrb.mxu1 %v313_v3 }
 0x12e   :  { %v2593_v10 = vpack.c.b16 %v521_v7, %v521_v7  ;;  %v2648_v2 = vpack.c.b16 %v593_v62, %v593_v62 }
 0x12f   :  { %v2117_v6 = vpop.permute.xlu0 %2116 }
 0x130   :  { %2136 = vrot.lane.b32.xlu2 %v2135_v5, %s2414_s22  ;;  %1999 = vmatmul.msk.bf16.vlgmr.msrb.gmra.mxu0 %vm236_vm1, %v209_v32  ;;  %v2118_v8 = vunpack.i.l.bf16 %v2117_v6  ;;  %v2119_v63 = vunpack.i.h.bf16 %v2117_v6 }
 0x132   :  { %v2591_v9 = vpack.c.bf16 %v2118_v8, %v2118_v8  ;;  %v2646_v1 = vpack.c.bf16 %v2119_v63, %v2119_v63 }
 0x134   :  { %2000 = vmatmul.msk.bf16.vlgmr.msrb.gmra.mxu1 %vm236_vm1, %v2506_v23  ;;  %v545_v22 = vunpack.c.l.b16 %v2591_v9  ;;  %v569_v3 = vunpack.c.l.b16 %v2646_v1 }
 0x136   :  { %v2611_v34 = vpack.c.b16 %v545_v22, %v545_v22  ;;  %v2656_v5 = vpack.c.b16 %v569_v3, %v569_v3 }
 0x137   :  { %v2595_v12 = vpop.permute.xlu0 %2126 }
 0x138   :  { %v2128_v13 = vunpack.i.l.bf16 %v2595_v12  ;;  %v2122_v16 = vpop.permute.xlu1 %2121  ;;  %523 = vrot.lane.b32.xlu2 %v2593_v10, %s2411_s2  ;;  %2001 = vmatmul.msk.bf16.vlgmr.msrb.gmra.mxu2 %vm236_vm1, %v2521_v29 }
 0x139   :  { %v2124_v17 = vunpack.i.h.bf16 %v2122_v16  ;;  %v2123_v18 = vunpack.i.l.bf16 %v2122_v16 }
 0x13a   :  { %v2603_v23 = vpack.c.bf16 %v2128_v13, %v2128_v13 }
 0x13b   :  { %v2605_v27 = vpack.c.bf16 %v2123_v18, %v2123_v18  ;;  %v2608_v30 = vpack.c.bf16 %v2124_v17, %v2124_v17 }
 0x13c   :  { %v617_v28 = vunpack.c.l.b16 %v2603_v23 }
 0x13d   :  { %v425_v32 = vunpack.c.l.b16 %v2605_v27  ;;  %v497_v39 = vunpack.c.l.b16 %v2608_v30 }
 0x13e   :  { %v618_v35 = vpack.c.b16 %v617_v28, %v617_v28 }
 0x13f   :  { %v2615_v29 = vpack.c.b16 %v425_v32, %v425_v32  ;;  %v2626_v47 = vpack.c.b16 %v497_v39, %v497_v39 }
 0x140   :  { %v2132_v41 = vpop.permute.xlu1 %2131  ;;  %547 = vrot.lane.b32.xlu2 %v2611_v34, %s2411_s2  ;;  %619 = vrot.lane.b32.xlu1 %v618_v35, %s2411_s2 }
 0x141   :  { %v2133_v42 = vunpack.i.l.bf16 %v2132_v41  ;;  %427 = vrot.lane.b32.xlu0 %v2615_v29, %s2411_s2  ;;  %v2134_v43 = vunpack.i.h.bf16 %v2132_v41 }
 0x143   :  { %v2624_v46 = vpack.c.bf16 %v2133_v42, %v2133_v42  ;;  %v2629_v51 = vpack.c.bf16 %v2134_v43, %v2134_v43 }
 0x145   :  { %v689_v48 = vunpack.c.l.b16 %v2624_v46  ;;  %v665_v60 = vunpack.c.l.b16 %v2629_v51 }
 0x147   :  { %v2633_v56 = vpack.c.b16 %v689_v48, %v689_v48  ;;  %v666_v0 = vpack.c.b16 %v665_v60, %v665_v60 }
 0x148   :  { %v356_v58 = vpop.permute.xlu1 %355  ;;  %499 = vrot.lane.b32.xlu1 %v2626_v47, %s2411_s2 }
 0x149   :  { %691 = vrot.lane.b32.xlu2 %v2633_v56, %s2411_s2  ;;  %451 = vrot.lane.b32.xlu0 %v2635_v57, %s2411_s2  ;;  %v361_v59 = vsel %vm236_vm1, %v356_v58, 0 }
 0x14a   :  { %370 = vmatpush.bf16.xpose.msra.mxu3 %v361_v59 }
 0x150   :  { %667 = vrot.lane.b32.xlu1 %v666_v0, %s2411_s2  ;;  %v2142_v8 = vpop.permute.xlu1 %2141 }
 0x151   :  { %595 = vrot.lane.b32.xlu0 %v2648_v2, %s2411_s2  ;;  %2002 = vmatmul.msk.bf16.vlgmr.msra.gmra.mxu3 %vm236_vm1, %v2540_v38  ;;  %v2144_v22 = vunpack.i.h.bf16 %v2142_v8  ;;  %v2143_v24 = vunpack.i.l.bf16 %v2142_v8 }
 0x153   :  { %v2683_v41 = vpack.c.bf16 %v2144_v22, %v2144_v22  ;;  %v2685_v42 = vpack.c.bf16 %v2143_v24, %v2143_v24 }
 0x155   :  { %v761_v44 = vunpack.c.l.b16 %v2683_v41  ;;  %v785_v45 = vunpack.c.l.b16 %v2685_v42 }
 0x157   :  { %v762_v59 = vpack.c.b16 %v761_v44, %v761_v44  ;;  %v786_v60 = vpack.c.b16 %v785_v45, %v785_v45  ;;  %v2799_v45 = vld [vmem:[#allocation5 + $0x1] ss:$0 sm:$0xff] }
 0x158   :  { %1160 = vrot.lane.b32.xlu1 %v2509_v25, %s2408_s17 }
 0x159   :  { %571 = vrot.lane.b32.xlu0 %v2656_v5, %s2411_s2 }
 0x160   :  { %1223 = vrot.lane.b32.xlu1 %v2574_v61, %s2408_s17 }
 0x168   :  { %1307 = vrot.lane.b32.xlu1 %v2565_v55, %s2408_s17  ;;  %v2129_v55 = vunpack.i.h.bf16 %v2595_v12 }
 0x16a   :  { %v2681_v32 = vpack.c.bf16 %v2129_v55, %v2129_v55 }
 0x16c   :  { %v641_v43 = vunpack.c.l.b16 %v2681_v32 }
 0x16e   :  { %v642_v58 = vpack.c.b16 %v641_v43, %v641_v43 }
 0x170   :  { %1433 = vrot.lane.b32.xlu1 %v618_v35, %s2408_s17 }
 0x178   :  { %1475 = vrot.lane.b32.xlu1 %v666_v0, %s2408_s17 }
 0x17a   :  { %v404_v38 = vpop.permute.xlu2 %403 }
 0x17b   :  { %v409_v6 = vsel %vm236_vm1, %v404_v38, 0 }
 0x17c   :  { %418 = vmatpush.bf16.xpose.msra.mxu2 %v409_v6 }
 0x182   :  { %v380_v7 = vpop.permute.xlu2 %379 }
 0x183   :  { %v385_v25 = vsel %vm236_vm1, %v380_v7, 0  ;;  %2004 = vmatmul.msk.bf16.vlgmr.msra.gmra.mxu2 %vm236_vm1, %v2554_v49 }
 0x184   :  { %394 = vmatpush.bf16.xpose.msra.mxu1 %v385_v25 }
 0x18a   :  { %v2137_v61 = vpop.permute.xlu2 %2136 }
 0x18b   :  { %v2139_v13 = vunpack.i.h.bf16 %v2137_v61  ;;  %v2138_v16 = vunpack.i.l.bf16 %v2137_v61  ;;  %2003 = vmatmul.msk.bf16.vlgmr.msra.gmra.mxu1 %vm236_vm1, %v2561_v53 }
 0x18d   :  { %v2675_v17 = vpack.c.bf16 %v2139_v13, %v2139_v13  ;;  %v2677_v18 = vpack.c.bf16 %v2138_v16, %v2138_v16 }
 0x18f   :  { %v737_v28 = vunpack.c.l.b16 %v2675_v17  ;;  %v713_v49 = vunpack.c.l.b16 %v2677_v18 }
 0x191   :  { %v714_v35 = vpack.c.b16 %v713_v49, %v713_v49  ;;  %v738_v39 = vpack.c.b16 %v737_v28, %v737_v28 }
 0x192   :  { %v476_v53 = vpop.permute.xlu1 %475  ;;  %v524_v0 = vpop.permute.xlu2 %523 }
 0x193   :  { %v481_v12 = vsel %vm236_vm1, %v476_v53, 0  ;;  %715 = vrot.lane.b32.xlu2 %v714_v35, %s2411_s2  ;;  %739 = vrot.lane.b32.xlu0 %v738_v39, %s2411_s2  ;;  %v2786_v53 = vld [vmem:[#allocation5] ss:$0 sm:$0xff] }
 0x194   :  { %1517 = vrot.lane.b32.xlu1 %v714_v35, %s2408_s17  ;;  %490 = vmatpush.bf16.xpose.msrb.mxu1 %v481_v12 }
 0x199   :  { %v2694_v48 = vpop.f32.mrf.mxu1 }
 0x19a   :  { %v548_v7 = vpop.permute.xlu2 %547 }
 0x19b   :  { %643 = vrot.lane.b32.xlu0 %v642_v58, %s2411_s2  ;;  %2007 = vmatmul.msk.bf16.vlgmr.msrb.gmra.mxu1 %vm236_vm1, %v2556_v50  ;;  %v553_v55 = vsel %vm236_vm1, %v548_v7, 0 }
 0x19c   :  { %763 = vrot.lane.b32.xlu2 %v762_v59, %s2411_s2  ;;  %787 = vrot.lane.b32.xlu1 %v786_v60, %s2411_s2 }
 0x1a1   :  { %v254_v62 = vpop.f32.mrf.mxu1 }
 0x1a2   :  { %v2811_v62 = vld [vmem:[#allocation5 + $0x2] ss:$0 sm:$0xff] }
 0x1a3   :  { %1096 = vrot.lane.b32.xlu0 %v2481_v14, %s2408_s17  ;;  %v692_v22 = vpop.permute.xlu2 %691 }
 0x1a4   :  { %1139 = vrot.lane.b32.xlu2 %v2536_v37, %s2408_s17  ;;  %1538 = vrot.lane.b32.xlu1 %v738_v39, %s2408_s17 }
 0x1ab   :  { %v2706_v63 = vpop.f32.mrf.mxu2  ;;  %1118 = vrot.lane.b32.xlu0 %v2496_v20, %s2408_s17 }
 0x1ac   :  { %1181 = vrot.lane.b32.xlu2 %v2524_v31, %s2408_s17  ;;  %1559 = vrot.lane.b32.xlu1 %v762_v59, %s2408_s17  ;;  %v529_v31 = vsel %vm236_vm1, %v524_v0, 0 }
 0x1ad   :  { %v2713_v50 = vpop.f32.mrf.mxu0 }
 0x1b1   :  { %v324_v3 = vpop.f32.mrf.mxu1 }
 0x1b2   :  { %v620_v14 = vpop.permute.xlu1 %619 }
 0x1b3   :  { %v428_v38 = vpop.permute.xlu0 %427  ;;  %v278_v6 = vpop.f32.mrf.mxu2  ;;  %1202 = vrot.lane.b32.xlu0 %v2546_v40, %s2408_s17  ;;  %v625_v61 = vsel %vm236_vm1, %v620_v14, 0 }
 0x1b4   :  { %1244 = vrot.lane.b32.xlu2 %v2563_v54, %s2408_s17  ;;  %1454 = vrot.lane.b32.xlu1 %v642_v58, %s2408_s17  ;;  %v433_v20 = vsel %vm236_vm1, %v428_v38, 0 }
 0x1b5   :  { %442 = vmatpush.bf16.xpose.msrb.mxu3 %v433_v20  ;;  %v302_v37 = vpop.f32.mrf.mxu0 }
 0x1b6   :  { %v2826_v37 = vld [vmem:[#allocation5 + $0x4] ss:$0 sm:$0xff] }
 0x1b9   :  { %v326_v25 = vpop.f32.mrf.mxu1 }
 0x1ba   :  { %v500_v8 = vpop.permute.xlu1 %499 }
 0x1bb   :  { %v452_v13 = vpop.permute.xlu0 %451  ;;  %v505_v40 = vsel %vm236_vm1, %v500_v8, 0  ;;  %v2724_v16 = vpop.f32.mrf.mxu2  ;;  %1286 = vrot.lane.b32.xlu0 %v2635_v57, %s2408_s17 }
 0x1bc   :  { %v457_v54 = vsel %vm236_vm1, %v452_v13, 0  ;;  %2005 = vmatmul.msk.bf16.vlgmr.msrb.gmra.mxu3 %vm236_vm1, %v2605_v27  ;;  %1265 = vrot.lane.b32.xlu2 %v2615_v29, %s2408_s17  ;;  %v697_v27 = vsel %vm236_vm1, %v692_v22, 0  ;;  %v2836_v22 = vadd.f32 %v2826_v37, %v2724_v16 }
 0x1bd   :  { %538 = vmatpush.bf16.xpose.msra.mxu3 %v529_v31  ;;  %466 = vmatpush.bf16.xpose.msra.mxu0 %v457_v54 }
 0x1be   :  { %514 = vmatpush.bf16.xpose.msrb.mxu2 %v505_v40 }
 0x1c2   :  { %v668_v29 = vpop.permute.xlu1 %667 }
 0x1c3   :  { %v596_v24 = vpop.permute.xlu0 %595  ;;  %v350_v28 = vpop.f32.mrf.mxu2  ;;  %1391 = vrot.lane.b32.xlu0 %v2656_v5, %s2408_s17 }
 0x1c4   :  { %v601_v57 = vsel %vm236_vm1, %v596_v24, 0  ;;  %2006 = vmatmul.msk.bf16.vlgmr.msra.gmra.mxu0 %vm236_vm1, %v2613_v36  ;;  %1349 = vrot.lane.b32.xlu2 %v2593_v10, %s2408_s17  ;;  %v673_v36 = vsel %vm236_vm1, %v668_v29, 0  ;;  %v868_v28 = vsel %vm236_vm1, %v2836_v22, -inf }
 0x1c5   :  { %562 = vmatpush.bf16.xpose.msrb.mxu0 %v553_v55  ;;  %634 = vmatpush.bf16.xpose.msrb.mxu3 %v625_v61 }
 0x1c6   :  { %2008 = vmatmul.msk.bf16.vlgmr.msrb.gmra.mxu2 %vm236_vm1, %v2608_v30  ;;  %v2757_v30 = vld [vmem:[#allocation5 + $0x3] ss:$0 sm:$0xff] }
 0x1c7   :  { %610 = vmatpush.bf16.xpose.msra.mxu2 %v601_v57 }
 0x1cb   :  { %v572_v49 = vpop.permute.xlu0 %571  ;;  %1496 = vrot.lane.b32.xlu0 %v2633_v56, %s2408_s17  ;;  %v2764_v56 = vadd.f32 %v2757_v30, %v324_v3 }
 0x1cc   :  { %v577_v5 = vsel %vm236_vm1, %v572_v49, 0  ;;  %2009 = vmatmul.msk.bf16.vlgmr.msra.gmra.mxu3 %vm236_vm1, %v2582_v4  ;;  %1412 = vrot.lane.b32.xlu2 %v2648_v2, %s2408_s17  ;;  %v1161_v4 = vpop.permute.xlu1 %1160 }
 0x1cd   :  { %586 = vmatpush.bf16.xpose.msra.mxu1 %v577_v5  ;;  %v1166_v54 = vsel %vm1101_vm2, %v1161_v4, 0 }
 0x1cf   :  { %706 = vmatpush.bf16.xpose.msrb.mxu2 %v697_v27 }
 0x1d3   :  { %1580 = vrot.lane.b32.xlu0 %v786_v60, %s2408_s17 }
 0x1d4   :  { %v372_v10 = vpop.f32.mrf.mxu3  ;;  %2010 = vmatmul.msk.bf16.vlgmr.msrb.gmra.mxu0 %vm236_vm1, %v2591_v9  ;;  %2011 = vmatmul.msk.bf16.vlgmr.msra.gmra.mxu1 %vm236_vm1, %v2646_v1  ;;  %v2768_v9 = vld [vmem:[#allocation5 + $0x5] ss:$0 sm:$0xff]  ;;  %v865_v1 = vsel %vm236_vm1, %v2764_v56, -inf }
 0x1d5   :  { %682 = vmatpush.bf16.xpose.msrb.mxu1 %v673_v36  ;;  %1370 = vrot.lane.b32.xlu2 %v2611_v34, %s2408_s17  ;;  %v2775_v34 = vadd.f32 %v2768_v9, %v372_v10 }
 0x1d6   :  { %2012 = vmatmul.msk.bf16.vlgmr.msra.gmra.mxu2 %vm236_vm1, %v2631_v52  ;;  %v1224_v52 = vpop.permute.xlu1 %1223 }
 0x1dc   :  { %v374_v2 = vpop.f32.mrf.mxu3  ;;  %2013 = vmatmul.msk.bf16.vlgmr.msrb.gmra.mxu3 %vm236_vm1, %v2603_v23  ;;  %v871_v23 = vsel %vm236_vm1, %v2775_v34, -inf }
 0x1dd   :  { %1328 = vrot.lane.b32.xlu2 %v2626_v47, %s2408_s17 }
 0x1de   :  { %866 = vmax.xlane.f32.xlu1 %v865_v1  ;;  %v2783_v35 = vpop.permute.xlu1 %1307 }
 0x1e4   :  { %2015 = vmatmul.msk.bf16.vlgmr.msrb.gmra.mxu1 %vm236_vm1, %v2629_v51  ;;  %v2795_v51 = vadd.f32 %v2786_v53, %v2694_v48  ;;  %v2809_v48 = vadd.f32 %v2799_v45, %v2706_v63 }
 0x1e6   :  { %2016 = vmatmul.msk.bf16.vlgmr.msrb.gmra.mxu2 %vm236_vm1, %v2624_v46  ;;  %872 = vmax.xlane.f32.xlu1 %v871_v23  ;;  %v2788_v12 = vpop.permute.xlu1 %1433  ;;  %v856_v44 = vsel %vm236_vm1, %v2795_v51, -inf  ;;  %v859_v0 = vsel %vm236_vm1, %v2809_v48, -inf }
 0x1ed   :  { %v716_v47 = vpop.permute.xlu2 %715 }
 0x1ee   :  { %v721_v39 = vsel %vm236_vm1, %v716_v47, 0  ;;  %v2801_v58 = vpop.permute.xlu1 %1475 }
 0x1ef   :  { %730 = vmatpush.bf16.xpose.msra.mxu3 %v721_v39 }
 0x1f6   :  { %v764_v43 = vpop.permute.xlu2 %763  ;;  %2017 = vmatmul.msk.bf16.vlgmr.msra.gmra.mxu3 %vm236_vm1, %v2677_v18  ;;  %v1229_v18 = vsel %vm1101_vm2, %v1224_v52, 0 }
 0x1f7   :  { %v769_v46 = vsel %vm236_vm1, %v764_v43, 0 }
 0x1f8   :  { %778 = vmatpush.bf16.xpose.msra.mxu1 %v769_v46 }
 0x1fd   :  { %857 = vmax.xlane.f32.xlu0 %v856_v44 }
 0x1fe   :  { %v1140_v59 = vpop.permute.xlu2 %1139 }
 0x1ff   :  { %v1145_v60 = vsel %vm1101_vm2, %v1140_v59, 0  ;;  %2019 = vmatmul.msk.bf16.vlgmr.msra.gmra.mxu1 %vm236_vm1, %v2683_v41  ;;  %v2819_v41 = vadd.f32 %v2811_v62, %v2713_v50 }
 0x200   :  { %1154 = vmatpush.bf16.msrb.mxu1 %v1145_v60 }
 0x201   :  { %v862_v7 = vsel %vm236_vm1, %v2819_v41, -inf }
 0x204   :  { %1238 = vmatpush.bf16.msra.mxu1 %v1229_v18 }
 0x205   :  { %v740_v3 = vpop.permute.xlu0 %739 }
 0x206   :  { %860 = vmax.xlane.f32.xlu2 %v859_v0  ;;  %v2815_v14 = vpop.permute.xlu1 %1517  ;;  %v420_v38 = vpop.f32.mrf.mxu2  ;;  %v745_v50 = vsel %vm236_vm1, %v740_v3, 0 }
 0x207   :  { %v1182_v63 = vpop.permute.xlu2 %1181  ;;  %v2848_v5 = vadd.f32 %v2799_v45, %v420_v38 }
 0x208   :  { %v396_v6 = vpop.f32.mrf.mxu1  ;;  %v1187_v29 = vsel %vm1101_vm2, %v1182_v63, 0 }
 0x209   :  { %v2822_v20 = vadd.f32 %v2786_v53, %v396_v6  ;;  %v877_v10 = vsel %vm236_vm1, %v2848_v5, -inf }
 0x20b   :  { %v874_v31 = vsel %vm236_vm1, %v2822_v20, -inf }
 0x20c   :  { %875 = vmax.xlane.f32.xlu0 %v874_v31 }
 0x20d   :  { %v644_v25 = vpop.permute.xlu0 %643 }
 0x20e   :  { %863 = vmax.xlane.f32.xlu2 %v862_v7  ;;  %v649_v8 = vsel %vm236_vm1, %v644_v25, 0  ;;  %v788_v61 = vpop.permute.xlu1 %787  ;;  %v422_v40 = vpop.f32.mrf.mxu2 }
 0x20f   :  { %v793_v13 = vsel %vm236_vm1, %v788_v61, 0  ;;  %658 = vmatpush.bf16.xpose.msra.mxu0 %v649_v8  ;;  %v1245_v24 = vpop.permute.xlu2 %1244 }
 0x210   :  { %802 = vmatpush.bf16.xpose.msra.mxu2 %v793_v13  ;;  %v398_v55 = vpop.f32.mrf.mxu1  ;;  %v1250_v49 = vsel %vm1101_vm2, %v1245_v24, 0 }
 0x215   :  { %v1097_v57 = vpop.permute.xlu0 %1096 }
 0x216   :  { %869 = vmax.xlane.f32.xlu2 %v868_v28  ;;  %v1103_v27 = vsel %vm1101_vm2, %v1097_v57, 0  ;;  %2014 = vmatmul.msk.bf16.vlgmr.msra.gmra.mxu0 %vm236_vm1, %v2681_v32  ;;  %v2863_v47 = vpop.permute.xlu1 %1538 }
 0x217   :  { %754 = vmatpush.bf16.xpose.msrb.mxu0 %v745_v50  ;;  %2020 = vmatmul.msk.bf16.vlgmr.msra.gmra.mxu2 %vm236_vm1, %v2685_v42  ;;  %v2861_v23 = vpop.permute.xlu2 %1265 }
 0x218   :  { %1175 = vmatpush.bf16.msrb.mxu2 %v1166_v54  ;;  %1112 = vmatpush.bf16.msrb.mxu3 %v1103_v27  ;;  %v492_v16 = vpop.f32.mrf.mxu1 }
 0x219   :  { %v2851_v36 = vadd.f32 %v2826_v37, %v492_v16 }
 0x21b   :  { %v886_v32 = vsel %vm236_vm1, %v2851_v36, -inf }
 0x21c   :  { %1259 = vmatpush.bf16.msra.mxu2 %v1250_v49  ;;  %1196 = vmatpush.bf16.msra.mxu3 %v1187_v29 }
 0x21d   :  { %887 = vmax.xlane.f32.xlu1 %v886_v32  ;;  %v1119_v4 = vpop.permute.xlu0 %1118 }
 0x21e   :  { %878 = vmax.xlane.f32.xlu2 %v877_v10  ;;  %v1124_v42 = vsel %vm1101_vm2, %v1119_v4, 0  ;;  %v2867_v46 = vpop.permute.xlu1 %1559 }
 0x21f   :  { %1133 = vmatpush.bf16.msra.mxu0 %v1124_v42  ;;  %v2865_v39 = vpop.permute.xlu2 %1349 }
 0x220   :  { %v494_v2 = vpop.f32.mrf.mxu1 }
 0x225   :  { %v1203_v1 = vpop.permute.xlu0 %1202 }
 0x226   :  { %v1208_v52 = vsel %vm1101_vm2, %v1203_v1, 0  ;;  %2018 = vmatmul.msk.bf16.vlgmr.msrb.gmra.mxu0 %vm236_vm1, %v2675_v17  ;;  %v2884_v31 = vpop.permute.xlu1 %1454 }
 0x227   :  { %1217 = vmatpush.bf16.msrb.mxu0 %v1208_v52  ;;  %v2882_v6 = vpop.permute.xlu2 %1412 }
 0x22d   :  { %v2886_v7 = vpop.permute.xlu0 %1286 }
 0x22f   :  { %v2898_v28 = vpop.permute.xlu2 %1370 }
 0x235   :  { %v2901_v27 = vpop.permute.xlu0 %1391 }
 0x23f   :  { %v444_v43 = vpop.f32.mrf.mxu3 }
 0x240   :  { %v2870_v44 = vadd.f32 %v2811_v62, %v444_v43  ;;  %v1329_v43 = vpop.permute.xlu2 %1328 }
 0x241   :  { %v468_v59 = vpop.f32.mrf.mxu0 }
 0x242   :  { %v2873_v60 = vadd.f32 %v2757_v30, %v468_v59  ;;  %v880_v17 = vsel %vm236_vm1, %v2870_v44, -inf  ;;  %v2917_v59 = vpop.permute.xlu0 %1496 }
 0x243   :  { %881 = vmax.xlane.f32.xlu2 %v880_v17 }
 0x244   :  { %v883_v18 = vsel %vm236_vm1, %v2873_v60, -inf }
 0x245   :  { %884 = vmax.xlane.f32.xlu0 %v883_v18 }
 0x247   :  { %v446_v0 = vpop.f32.mrf.mxu3 }
 0x248   :  { %v1334_v0 = vsel %vm1101_vm2, %v1329_v43, 0 }
 0x249   :  { %v516_v3 = vpop.f32.mrf.mxu2  ;;  %v470_v63 = vpop.f32.mrf.mxu0 }
 0x24a   :  { %v2880_v38 = vadd.f32 %v2768_v9, %v516_v3 }
 0x24c   :  { %v889_v25 = vsel %vm236_vm1, %v2880_v38, -inf }
 0x24d   :  { %890 = vmax.xlane.f32.xlu1 %v889_v25 }
 0x24f   :  { %v540_v61 = vpop.f32.mrf.mxu3 }
 0x250   :  { %v2891_v50 = vadd.f32 %v2786_v53, %v540_v61 }
 0x251   :  { %v518_v8 = vpop.f32.mrf.mxu2  ;;  %v564_v13 = vpop.f32.mrf.mxu0 }
 0x252   :  { %v588_v40 = vpop.f32.mrf.mxu1  ;;  %v867_v55 = vpop.xlane.xlu1 %866  ;;  %v892_v24 = vsel %vm236_vm1, %v2891_v50, -inf  ;;  %v2906_v16 = vadd.f32 %v2799_v45, %v564_v13 }
 0x253   :  { %v2894_v54 = vadd.f32 %v2811_v62, %v588_v40  ;;  %v931_v57 = vsub.f32 %v2764_v56, %v867_v55  ;;  %893 = vmax.xlane.f32.xlu0 %v892_v24  ;;  %v2933_v55 = vpop.permute.xlu0 %1580 }
 0x254   :  { %v895_v56 = vsel %vm236_vm1, %v2906_v16, -inf }
 0x255   :  { %v898_v29 = vsel %vm236_vm1, %v2894_v54, -inf  ;;  %v958_v49 = vmul.f32 1.442695, %v931_v57 }
 0x256   :  { %899 = vmax.xlane.f32.xlu1 %v898_v29 }
 0x257   :  { %2153 = vpow2.f32 %v958_v49  ;;  %v542_v32 = vpop.f32.mrf.mxu3 }
 0x259   :  { %v612_v10 = vpop.f32.mrf.mxu2  ;;  %v566_v42 = vpop.f32.mrf.mxu0 }
 0x25a   :  { %v2909_v4 = vadd.f32 %v2757_v30, %v612_v10  ;;  %v590_v2 = vpop.f32.mrf.mxu1 }
 0x25b   :  { %896 = vmax.xlane.f32.xlu0 %v895_v56 }
 0x25c   :  { %v901_v1 = vsel %vm236_vm1, %v2909_v4, -inf }
 0x25d   :  { %902 = vmax.xlane.f32.xlu2 %v901_v1  ;;  %v2915_v52 = vpop.eup %2153 }
 0x25e   :  { %v1075_v17 = vpack.c.bf16 %v2915_v52, %v2915_v52 }
 0x25f   :  { %v636_v18 = vpop.f32.mrf.mxu3 }
 0x260   :  { %v2923_v63 = vadd.f32 %v2826_v37, %v636_v18  ;;  %2024 = vmatmul.msk.bf16.vlgmr.msrb.gmra.mxu2 %vm236_vm1, %v1075_v17 }
 0x261   :  { %v614_v3 = vpop.f32.mrf.mxu2  ;;  %1343 = vmatpush.bf16.msrb.mxu2 %v1334_v0  ;;  %v1271_v0 = vsel %vm1101_vm2, %v2861_v23, 0  ;;  %v1292_v23 = vsel %vm1101_vm2, %v2886_v7, 0  ;;  %v1313_v7 = vsel %vm1101_vm2, %v2783_v35, 0 }
 0x262   :  { %v684_v25 = vpop.f32.mrf.mxu1  ;;  %v904_v61 = vsel %vm236_vm1, %v2923_v63, -inf }
 0x263   :  { %v2927_v8 = vadd.f32 %v2786_v53, %v684_v25  ;;  %905 = vmax.xlane.f32.xlu0 %v904_v61 }
 0x265   :  { %v910_v13 = vsel %vm236_vm1, %v2927_v8, -inf }
 0x266   :  { %911 = vmax.xlane.f32.xlu2 %v910_v13 }
 0x267   :  { %v638_v40 = vpop.f32.mrf.mxu3 }
 0x269   :  { %v2935_v24 = vpop.f32.mrf.mxu2 }
 0x26a   :  { %v686_v57 = vpop.f32.mrf.mxu1 }
 0x270   :  { %v858_v49 = vpop.xlane.xlu0 %857 }
 0x271   :  { %v710_v29 = vpop.f32.mrf.mxu2  ;;  %v928_v32 = vsub.f32 %v2795_v51, %v858_v49 }
 0x273   :  { %v952_v53 = vmul.f32 1.442695, %v928_v32 }
 0x275   :  { %2155 = vpow2.f32 %v952_v53 }
 0x279   :  { %v861_v10 = vpop.xlane.xlu2 %860  ;;  %v732_v42 = vpop.f32.mrf.mxu3 }
 0x27a   :  { %v929_v2 = vsub.f32 %v2809_v48, %v861_v10  ;;  %v2940_v56 = vadd.f32 %v2811_v62, %v732_v42  ;;  %v873_v48 = vpop.xlane.xlu1 %872 }
 0x27b   :  { %v2942_v1 = vpop.eup %2155  ;;  %v933_v13 = vsub.f32 %v2775_v34, %v873_v48 }
 0x27c   :  { %v1072_v43 = vpack.c.bf16 %v2942_v1, %v2942_v1  ;;  %v954_v17 = vmul.f32 1.442695, %v929_v2  ;;  %v2946_v18 = vpop.f32.mrf.mxu1  ;;  %v916_v51 = vsel %vm236_vm1, %v2940_v56, -inf }
 0x27d   :  { %917 = vmax.xlane.f32.xlu0 %v916_v51  ;;  %v962_v49 = vmul.f32 1.442695, %v933_v13  ;;  %v1376_v13 = vsel %vm1101_vm2, %v2898_v28, 0 }
 0x27e   :  { %2157 = vpow2.f32 %v954_v17  ;;  %2021 = vmatmul.msk.bf16.vlgmr.msrb.gmra.mxu3 %vm236_vm1, %v1072_v43 }
 0x27f   :  { %1280 = vmatpush.bf16.msrb.mxu3 %v1271_v0  ;;  %v876_v32 = vpop.xlane.xlu0 %875 }
 0x280   :  { %v934_v34 = vsub.f32 %v2822_v20, %v876_v32 }
 0x281   :  { %v864_v62 = vpop.xlane.xlu2 %863  ;;  %v734_v3 = vpop.f32.mrf.mxu3 }
 0x282   :  { %v930_v25 = vsub.f32 %v2819_v41, %v864_v62  ;;  %v964_v43 = vmul.f32 1.442695, %v934_v34  ;;  %v1397_v34 = vsel %vm1101_vm2, %v2901_v27, 0 }
 0x284   :  { %v2954_v61 = vpop.eup %2157  ;;  %v956_v40 = vmul.f32 1.442695, %v930_v25  ;;  %v782_v57 = vpop.f32.mrf.mxu1 }
 0x285   :  { %v1073_v29 = vpack.c.bf16 %v2954_v61, %v2954_v61  ;;  %v1003_v27 = vsel %vm236_vm1, %v2954_v61, 0.0 }
 0x286   :  { %2159 = vpow2.f32 %v956_v40 }
 0x287   :  { %2022 = vmatmul.msk.bf16.vlgmr.msra.gmra.mxu0 %vm236_vm1, %v1073_v29  ;;  %2161 = vpow2.f32 %v962_v49 }
 0x288   :  { %1301 = vmatpush.bf16.msra.mxu0 %v1292_v23 }
 0x289   :  { %v870_v53 = vpop.xlane.xlu2 %869 }
 0x28a   :  { %v932_v41 = vsub.f32 %v2836_v22, %v870_v53 }
 0x28c   :  { %v2963_v10 = vpop.eup %2159  ;;  %v960_v42 = vmul.f32 1.442695, %v932_v41  ;;  %v1418_v41 = vsel %vm1101_vm2, %v2882_v6, 0 }
 0x28d   :  { %v1074_v2 = vpack.c.bf16 %v2963_v10, %v2963_v10  ;;  %v2971_v51 = vpop.eup %2161 }
 0x28e   :  { %2163 = vpow2.f32 %v960_v42  ;;  %v1077_v35 = vpack.c.bf16 %v2971_v51, %v2971_v51 }
 0x28f   :  { %2023 = vmatmul.msk.bf16.vlgmr.msrb.gmra.mxu1 %vm236_vm1, %v1074_v2  ;;  %2165 = vpow2.f32 %v964_v43  ;;  %v3023_v43 = vadd.f32 %v2826_v37, %v2946_v18 }
 0x290   :  { %1322 = vmatpush.bf16.msrb.mxu1 %v1313_v7  ;;  %v888_v40 = vpop.xlane.xlu1 %887 }
 0x291   :  { %v879_v17 = vpop.xlane.xlu2 %878  ;;  %v938_v28 = vsub.f32 %v2851_v36, %v888_v40 }
 0x292   :  { %v935_v22 = vsub.f32 %v2848_v5, %v879_v17  ;;  %v1355_v5 = vsel %vm1101_vm2, %v2865_v39, 0  ;;  %v2997_v39 = vadd.f32 %v2799_v45, %v2935_v24 }
 0x293   :  { %v660_v0 = vpop.f32.mrf.mxu0  ;;  %v972_v45 = vmul.f32 1.442695, %v938_v28 }
 0x294   :  { %v2974_v48 = vpop.eup %2163  ;;  %v966_v20 = vmul.f32 1.442695, %v935_v22  ;;  %v2977_v62 = vadd.f32 %v2768_v9, %v660_v0  ;;  %v913_v36 = vsel %vm236_vm1, %v2997_v39, -inf  ;;  %v1481_v0 = vsel %vm1101_vm2, %v2801_v58, 0 }
 0x295   :  { %v1076_v3 = vpack.c.bf16 %v2974_v48, %v2974_v48  ;;  %v2991_v57 = vpop.eup %2165 }
 0x296   :  { %2167 = vpow2.f32 %v966_v20  ;;  %v907_v25 = vsel %vm236_vm1, %v2977_v62, -inf  ;;  %v1078_v32 = vpack.c.bf16 %v2991_v57, %v2991_v57 }
 0x297   :  { %2025 = vmatmul.msk.bf16.vlgmr.msra.gmra.mxu3 %vm236_vm1, %v1076_v3  ;;  %2026 = vmatmul.msk.bf16.vlgmr.msrb.gmra.mxu0 %vm236_vm1, %v1077_v35  ;;  %2169 = vpow2.f32 %v972_v45 }
 0x298   :  { %1364 = vmatpush.bf16.msra.mxu3 %v1355_v5  ;;  %1385 = vmatpush.bf16.msrb.mxu0 %v1376_v13 }
 0x299   :  { %908 = vmax.xlane.f32.xlu1 %v907_v25 }
 0x29a   :  { %v804_v29 = vpop.f32.mrf.mxu2 }
 0x29b   :  { %v662_v23 = vpop.f32.mrf.mxu0  ;;  %v3033_v61 = vadd.f32 %v2768_v9, %v804_v29 }
 0x29c   :  { %v2993_v49 = vpop.eup %2167 }
 0x29d   :  { %v1079_v53 = vpack.c.bf16 %v2993_v49, %v2993_v49  ;;  %v3019_v7 = vpop.eup %2169  ;;  %v925_v37 = vsel %vm236_vm1, %v3033_v61, -inf }
 0x29e   :  { %v1082_v22 = vpack.c.bf16 %v3019_v7, %v3019_v7 }
 0x29f   :  { %2027 = vmatmul.msk.bf16.vlgmr.msra.gmra.mxu1 %vm236_vm1, %v1078_v32  ;;  %2028 = vmatmul.msk.bf16.vlgmr.msra.gmra.mxu2 %vm236_vm1, %v1079_v53 }
 0x2a0   :  { %1406 = vmatpush.bf16.msra.mxu1 %v1397_v34  ;;  %1427 = vmatpush.bf16.msra.mxu2 %v1418_v41 }
 0x2a1   :  { %914 = vmax.xlane.f32.xlu1 %v913_v36 }
 0x2a2   :  { %v806_v24 = vpop.f32.mrf.mxu2 }
 0x2a3   :  { %v756_v42 = vpop.f32.mrf.mxu0  ;;  %v1502_v24 = vsel %vm1101_vm2, %v2917_v59, 0 }
 0x2a4   :  { %v3013_v2 = vadd.f32 %v2757_v30, %v756_v42  ;;  %v922_v30 = vsel %vm236_vm1, %v3023_v43, -inf }
 0x2a6   :  { %v919_v6 = vsel %vm236_vm1, %v3013_v2, -inf }
 0x2a7   :  { %920 = vmax.xlane.f32.xlu2 %v919_v6 }
 0x2a9   :  { %1004 = vadd.xlane.f32.xlu1 %v1003_v27 }
 0x2ab   :  { %v758_v17 = vpop.f32.mrf.mxu0 }
 0x2af   :  { %2031 = vmatmul.msk.bf16.vlgmr.msrb.gmra.mxu1 %vm236_vm1, %v1082_v22  ;;  %923 = vmax.xlane.f32.xlu2 %v922_v30 }
 0x2b0   :  { %1490 = vmatpush.bf16.msrb.mxu1 %v1481_v0  ;;  %v1523_v0 = vsel %vm1101_vm2, %v2815_v14, 0 }
 0x2b6   :  { %v882_v20 = vpop.xlane.xlu2 %881 }
 0x2b7   :  { %v936_v18 = vsub.f32 %v2870_v44, %v882_v20  ;;  %926 = vmax.xlane.f32.xlu2 %v925_v37  ;;  %v1439_v44 = vsel %vm1101_vm2, %v2788_v12, 0 }
 0x2b8   :  { %v885_v35 = vpop.xlane.xlu0 %884 }
 0x2b9   :  { %v968_v3 = vmul.f32 1.442695, %v936_v18  ;;  %v937_v25 = vsub.f32 %v2873_v60, %v885_v35 }
 0x2bb   :  { %2171 = vpow2.f32 %v968_v3  ;;  %v970_v58 = vmul.f32 1.442695, %v937_v25 }
 0x2bd   :  { %2173 = vpow2.f32 %v970_v58 }
 0x2c0   :  { %v891_v5 = vpop.xlane.xlu1 %890 }
 0x2c1   :  { %v939_v13 = vsub.f32 %v2880_v38, %v891_v5  ;;  %v3040_v40 = vpop.eup %2171  ;;  %v1460_v38 = vsel %vm1101_vm2, %v2884_v31, 0  ;;  %v2151_v31 = vld [vmem:[%s3350_s3] ss:$0 sm:$0xff]  ;;  %s2415_s3 = smov 32  }
 0x2c2   :  { %v1080_v29 = vpack.c.bf16 %v3040_v40, %v3040_v40 }
 0x2c3   :  { %v974_v9 = vmul.f32 1.442695, %v939_v13  ;;  %v3044_v23 = vpop.eup %2173  ;;  %v1586_v13 = vsel %vm1101_vm2, %v2933_v55, 0 }
 0x2c4   :  { %v1081_v60 = vpack.c.bf16 %v3044_v23, %v3044_v23  ;;  %2029 = vmatmul.msk.bf16.vlgmr.msrb.gmra.mxu3 %vm236_vm1, %v1080_v29 }
 0x2c5   :  { %2175 = vpow2.f32 %v974_v9  ;;  %1448 = vmatpush.bf16.msrb.mxu3 %v1439_v44 }
 0x2c6   :  { %v894_v28 = vpop.xlane.xlu0 %893  ;;  %2030 = vmatmul.msk.bf16.vlgmr.msra.gmra.mxu0 %vm236_vm1, %v1081_v60 }
 0x2c7   :  { %v940_v32 = vsub.f32 %v2891_v50, %v894_v28  ;;  %1469 = vmatpush.bf16.msra.mxu0 %v1460_v38 }
 0x2c9   :  { %v900_v53 = vpop.xlane.xlu1 %899  ;;  %v976_v34 = vmul.f32 1.442695, %v940_v32  ;;  %v1000_v32 = vsel %vm236_vm1, %v2942_v1, 0.0 }
 0x2ca   :  { %v942_v12 = vsub.f32 %v2894_v54, %v900_v53 }
 0x2cb   :  { %v3055_v41 = vpop.eup %2175  ;;  %2177 = vpow2.f32 %v976_v34 }
 0x2cc   :  { %v1083_v45 = vpack.c.bf16 %v3055_v41, %v3055_v41  ;;  %v980_v36 = vmul.f32 1.442695, %v942_v12  ;;  %v1006_v12 = vsel %vm236_vm1, %v2963_v10, 0.0 }
 0x2ce   :  { %2032 = vmatmul.msk.bf16.vlgmr.msrb.gmra.mxu2 %vm236_vm1, %v1083_v45  ;;  %2179 = vpow2.f32 %v980_v36  ;;  %v897_v50 = vpop.xlane.xlu0 %896  ;;  %v1024_v36 = vsel %vm236_vm1, %v3040_v40, 0.0 }
 0x2cf   :  { %1511 = vmatpush.bf16.msrb.mxu2 %v1502_v24  ;;  %v941_v54 = vsub.f32 %v2906_v16, %v897_v50  ;;  %1744 = vrot.lane.b32.xlu2 %v2151_v31, %s2411_s2 }
 0x2d0   :  { %v903_v42 = vpop.xlane.xlu2 %902 }
 0x2d1   :  { %v943_v6 = vsub.f32 %v2909_v4, %v903_v42  ;;  %v3069_v27 = vpop.eup %2177  ;;  %v978_v17 = vmul.f32 1.442695, %v941_v54  ;;  %v1565_v4 = vsel %vm1101_vm2, %v2867_v46, 0  ;;  %v1030_v54 = vsel %vm236_vm1, %v3019_v7, 0.0 }
 0x2d2   :  { %v1084_v22 = vpack.c.bf16 %v3069_v27, %v3069_v27 }
 0x2d3   :  { %v982_v30 = vmul.f32 1.442695, %v943_v6  ;;  %2181 = vpow2.f32 %v978_v17 }
 0x2d4   :  { %v3073_v59 = vpop.eup %2179  ;;  %2033 = vmatmul.msk.bf16.vlgmr.msra.gmra.mxu3 %vm236_vm1, %v1084_v22 }
 0x2d5   :  { %v1086_v16 = vpack.c.bf16 %v3073_v59, %v3073_v59  ;;  %2183 = vpow2.f32 %v982_v30  ;;  %1532 = vmatpush.bf16.msra.mxu3 %v1523_v0  ;;  %v1036_v30 = vsel %vm236_vm1, %v3069_v27, 0.0 }
 0x2d6   :  { %v906_v20 = vpop.xlane.xlu0 %905 }
 0x2d7   :  { %2035 = vmatmul.msk.bf16.vlgmr.msra.gmra.mxu1 %vm236_vm1, %v1086_v16  ;;  %v944_v37 = vsub.f32 %v2923_v63, %v906_v20  ;;  %v1544_v63 = vsel %vm1101_vm2, %v2863_v47, 0 }
 0x2d8   :  { %1574 = vmatpush.bf16.msra.mxu1 %v1565_v4 }
 0x2d9   :  { %v912_v18 = vpop.xlane.xlu2 %911  ;;  %v3084_v35 = vpop.eup %2181  ;;  %v984_v14 = vmul.f32 1.442695, %v944_v37 }
 0x2da   :  { %v946_v3 = vsub.f32 %v2927_v8, %v912_v18  ;;  %v1085_v58 = vpack.c.bf16 %v3084_v35, %v3084_v35 }
 0x2db   :  { %v3087_v25 = vpop.eup %2183  ;;  %2185 = vpow2.f32 %v984_v14 }
 0x2dc   :  { %v1087_v46 = vpack.c.bf16 %v3087_v25, %v3087_v25  ;;  %v988_v5 = vmul.f32 1.442695, %v946_v3  ;;  %2034 = vmatmul.msk.bf16.vlgmr.msrb.gmra.mxu0 %vm236_vm1, %v1085_v58 }
 0x2dd   :  { %1553 = vmatpush.bf16.msrb.mxu0 %v1544_v63 }
 0x2de   :  { %2187 = vpow2.f32 %v988_v5  ;;  %2036 = vmatmul.msk.bf16.vlgmr.msra.gmra.mxu2 %vm236_vm1, %v1087_v46 }
 0x2df   :  { %1595 = vmatpush.bf16.msra.mxu2 %v1586_v13 }
 0x2e1   :  { %v3099_v8 = vpop.eup %2185 }
 0x2e2   :  { %v1088_v9 = vpack.c.bf16 %v3099_v8, %v3099_v8 }
 0x2e3   :  { %v3105_v44 = vpop.f32.mrf.mxu2 }
 0x2e4   :  { %v3103_v29 = vpop.eup %2187  ;;  %2037 = vmatmul.msk.bf16.vlgmr.msrb.gmra.mxu3 %vm236_vm1, %v1088_v9 }
 0x2e5   :  { %v1090_v47 = vpack.c.bf16 %v3103_v29, %v3103_v29 }
 0x2e7   :  { %2039 = vmatmul.msk.bf16.vlgmr.msrb.gmra.mxu1 %vm236_vm1, %v1090_v47 }
 0x2eb   :  { %v1179_v55 = vpop.f32.mrf.mxu2 }
 0x2ec   :  { %v1045_v55 = vsel %vm236_vm1, %v3087_v25, 0.0 }
 0x2f0   :  { %v918_v60 = vpop.xlane.xlu0 %917 }
 0x2f1   :  { %v948_v38 = vsub.f32 %v2940_v56, %v918_v60 }
 0x2f3   :  { %v992_v28 = vmul.f32 1.442695, %v948_v38 }
 0x2f5   :  { %2189 = vpow2.f32 %v992_v28 }
 0x2f8   :  { %1001 = vadd.xlane.f32.xlu2 %v1000_v32 }
 0x2fb   :  { %v3114_v53 = vpop.eup %2189 }
 0x2fc   :  { %v1092_v34 = vpack.c.bf16 %v3114_v53, %v3114_v53 }
 0x2fe   :  { %2041 = vmatmul.msk.bf16.vlgmr.msra.gmra.mxu3 %vm236_vm1, %v1092_v34 }
 0x300   :  { %1007 = vadd.xlane.f32.xlu2 %v1006_v12 }
 0x301   :  { %v3121_v45 = vpop.f32.mrf.mxu3 }
 0x304   :  { %v3123_v56 = vpop.f32.mrf.mxu0 }
 0x308   :  { %1025 = vadd.xlane.f32.xlu2 %v1024_v36 }
 0x309   :  { %v1116_v1 = vpop.f32.mrf.mxu3 }
 0x30c   :  { %v1137_v31 = vpop.f32.mrf.mxu0  ;;  %v3127_v24 = vpop.f32.mrf.mxu1 }
 0x30d   :  { %v909_v50 = vpop.xlane.xlu1 %908 }
 0x30e   :  { %v945_v42 = vsub.f32 %v2977_v62, %v909_v50 }
 0x310   :  { %v986_v10 = vmul.f32 1.442695, %v945_v42  ;;  %1031 = vadd.xlane.f32.xlu2 %v1030_v54 }
 0x312   :  { %2191 = vpow2.f32 %v986_v10 }
 0x314   :  { %v1158_v6 = vpop.f32.mrf.mxu1  ;;  %v3132_v17 = vpop.f32.mrf.mxu0 }
 0x315   :  { %v915_v22 = vpop.xlane.xlu1 %914 }
 0x316   :  { %v947_v40 = vsub.f32 %v2997_v39, %v915_v22 }
 0x318   :  { %v2192_v0 = vpop.eup %2191  ;;  %v990_v16 = vmul.f32 1.442695, %v947_v40  ;;  %1037 = vadd.xlane.f32.xlu2 %v1036_v30 }
 0x319   :  { %v1089_v4 = vpack.c.bf16 %v2192_v0, %v2192_v0  ;;  %v1051_v39 = vsel %vm236_vm1, %v2192_v0, 0.0 }
 0x31a   :  { %2193 = vpow2.f32 %v990_v16  ;;  %v3137_v62 = vpop.f32.mrf.mxu3  ;;  %v921_v7 = vpop.xlane.xlu2 %920 }
 0x31b   :  { %2038 = vmatmul.msk.bf16.vlgmr.msra.gmra.mxu0 %vm236_vm1, %v1089_v4  ;;  %v949_v20 = vsub.f32 %v3013_v2, %v921_v7 }
 0x31c   :  { %v1221_v37 = vpop.f32.mrf.mxu0  ;;  %v3141_v18 = vpop.f32.mrf.mxu1 }
 0x31d   :  { %v994_v14 = vmul.f32 1.442695, %v949_v20 }
 0x31f   :  { %2195 = vpow2.f32 %v994_v14 }
 0x320   :  { %v3144_v27 = vpop.eup %2193  ;;  %1052 = vadd.xlane.f32.xlu2 %v1051_v39 }
 0x321   :  { %v1091_v3 = vpack.c.bf16 %v3144_v27, %v3144_v27 }
 0x322   :  { %v1200_v58 = vpop.f32.mrf.mxu3  ;;  %v3148_v46 = vpop.f32.mrf.mxu2 }
 0x323   :  { %2040 = vmatmul.msk.bf16.vlgmr.msrb.gmra.mxu2 %vm236_vm1, %v1091_v3  ;;  %v924_v5 = vpop.xlane.xlu2 %923 }
 0x324   :  { %v950_v2 = vsub.f32 %v3023_v43, %v924_v5  ;;  %v1242_v63 = vpop.f32.mrf.mxu1 }
 0x325   :  { %v3152_v13 = vpop.eup %2195 }
 0x326   :  { %v996_v9 = vmul.f32 1.442695, %v950_v2  ;;  %v1093_v47 = vpack.c.bf16 %v3152_v13, %v3152_v13 }
 0x328   :  { %2197 = vpow2.f32 %v996_v9  ;;  %1046 = vadd.xlane.f32.xlu2 %v1045_v55 }
 0x32a   :  { %v1263_v60 = vpop.f32.mrf.mxu2 }
 0x32b   :  { %2042 = vmatmul.msk.bf16.vlgmr.msrb.gmra.mxu0 %vm236_vm1, %v1093_v47  ;;  %v927_v38 = vpop.xlane.xlu2 %926 }
 0x32c   :  { %v951_v28 = vsub.f32 %v3033_v61, %v927_v38  ;;  %v3160_v32 = vpop.f32.mrf.mxu1 }
 0x32e   :  { %v3162_v43 = vpop.eup %2197  ;;  %v998_v34 = vmul.f32 1.442695, %v951_v28 }
 0x32f   :  { %v1094_v12 = vpack.c.bf16 %v3162_v43, %v3162_v43 }
 0x330   :  { %2199 = vpow2.f32 %v998_v34 }
 0x331   :  { %2043 = vmatmul.msk.bf16.vlgmr.msra.gmra.mxu1 %vm236_vm1, %v1094_v12 }
 0x333   :  { %v3167_v25 = vpop.permute.xlu2 %1744 }
 0x334   :  { %v1747_v36 = vadd.f32 %v3167_v25, %v2477_v11  ;;  %v1748_v1 = vadd.f32 %v3167_v25, %v2485_v15  ;;  %v1750_v61 = vadd.f32 %v3167_v25, %v2500_v21  ;;  %v1326_v31 = vpop.f32.mrf.mxu1 }
 0x336   :  { %v3175_v50 = vpop.eup %2199  ;;  %v2045_v42 = vmul.f32 -1.442695, %v1747_v36  ;;  %v2046_v54 = vmul.f32 -1.442695, %v1748_v1  ;;  %v2048_v6 = vmul.f32 -1.442695, %v1750_v61 }
 0x337   :  { %v1095_v10 = vpack.c.bf16 %v3175_v50, %v3175_v50 }
 0x338   :  { %2201 = vpow2.f32 %v2045_v42 }
 0x339   :  { %2203 = vpow2.f32 %v2046_v54  ;;  %2044 = vmatmul.msk.bf16.vlgmr.msra.gmra.mxu2 %vm236_vm1, %v1095_v10 }
 0x33a   :  { %2205 = vpow2.f32 %v2048_v6 }
 0x33e   :  { %v2202_v11 = vpop.eup %2201 }
 0x33f   :  { %v2204_v22 = vpop.eup %2203  ;;  %v1771_v15 = vadd.f32 1.0, %v2202_v11 }
 0x340   :  { %v1772_v40 = vadd.f32 1.0, %v2204_v22  ;;  %v2206_v30 = vpop.eup %2205 }
 0x341   :  { %2207 = vrcp.f32 %v1771_v15  ;;  %v1774_v21 = vadd.f32 1.0, %v2206_v30  ;;  %v1788_v5 = vand.u32 2147483648, %v1771_v15  ;;  %v1786_v47 = vand.u32 2147483647, %v1771_v15 }
 0x342   :  { %2209 = vrcp.f32 %v1772_v40  ;;  %v1803_v63 = vand.u32 2147483648, %v1772_v40  ;;  %v1801_v60 = vand.u32 2147483647, %v1772_v40  ;;  %vm1782_vm5 = vweird.f32 %v1771_v15 }
 0x343   :  { %v3180_v0 = vpop.f32.mrf.mxu0  ;;  %2211 = vrcp.f32 %v1774_v21  ;;  %vm1797_vm6 = vweird.f32 %v1772_v40  ;;  %v1789_v1 = vor.u32 1.1754944e-38, %v1788_v5  ;;  %vm1787_vm9 = vcmp.eq.f32.partialorder %v1786_v47, 8.507059e+37 }
 0x344   :  { %v1804_v31 = vor.u32 1.1754944e-38, %v1803_v63  ;;  %vm1802_vm10 = vcmp.eq.f32.partialorder %v1801_v60, 8.507059e+37  ;;  %vm1827_vm12 = vweird.f32 %v1774_v21 }
 0x347   :  { %v2208_v16 = vpop.eup %2207  ;;  %v3182_v4 = vpop.f32.mrf.mxu3 }
 0x348   :  { %v2210_v7 = vpop.eup %2209  ;;  %v1778_v20 = vmul.f32 %v2208_v16, %v1771_v15  ;;  %vm1783_vm3 = vweird.f32 %v2208_v16  ;;  %v1833_v15 = vand.u32 2147483648, %v1774_v21 }
 0x349   :  { %v1793_v37 = vmul.f32 %v2210_v7, %v1772_v40  ;;  %v2212_v14 = vpop.eup %2211  ;;  %vm1798_vm4 = vweird.f32 %v2210_v7  ;;  %vm1784_vm7 = vmor %vm1782_vm5, %vm1783_vm3  ;;  %v1831_v40 = vand.u32 2147483647, %v1774_v21 }
 0x34a   :  { %v1779_v39 = vsub.f32 1.0, %v1778_v20  ;;  %v1823_v2 = vmul.f32 %v2212_v14, %v1774_v21  ;;  %vm1799_vm8 = vmor %vm1797_vm6, %vm1798_vm4  ;;  %vm1828_vm11 = vweird.f32 %v2212_v14  ;;  %v1834_v20 = vor.u32 1.1754944e-38, %v1833_v15 }
 0x34b   :  { %v1305_v3 = vpop.f32.mrf.mxu0  ;;  %v1794_v58 = vsub.f32 1.0, %v1793_v37  ;;  %vm1829_vm13 = vmor %vm1827_vm12, %vm1828_vm11  ;;  %vm1832_vm14 = vcmp.eq.f32.partialorder %v1831_v40, 8.507059e+37  ;;  %v1749_v21 = vadd.f32 %v3167_v25, %v2494_v19  ;;  %v1009_v19 = vsel %vm236_vm1, %v2915_v52, 0.0 }
 0x34c   :  { %v1780_v9 = vmul.f32 %v2208_v16, %v1779_v39  ;;  %v1824_v38 = vsub.f32 1.0, %v1823_v2  ;;  %v1042_v52 = vsel %vm236_vm1, %v3073_v59, 0.0  ;;  %v1063_v59 = vsel %vm236_vm1, %v3152_v13, 0.0 }
 0x34d   :  { %v1795_v55 = vmul.f32 %v2210_v7, %v1794_v58  ;;  %v1018_v13 = vsel %vm236_vm1, %v2991_v57, 0.0  ;;  %v1060_v57 = vsel %vm236_vm1, %v3114_v53, 0.0 }
 0x34e   :  { %v1781_v28 = vadd.f32 %v2208_v16, %v1780_v9  ;;  %v1825_v61 = vmul.f32 %v2212_v14, %v1824_v38  ;;  %v2047_v9 = vmul.f32 -1.442695, %v1749_v21  ;;  %v1057_v21 = vsel %vm236_vm1, %v3144_v27, 0.0 }
 0x34f   :  { %v1284_v34 = vpop.f32.mrf.mxu3  ;;  %v1796_v36 = vadd.f32 %v2210_v7, %v1795_v55  ;;  %v1027_v27 = vsel %vm236_vm1, %v3044_v23, 0.0  ;;  %v1066_v23 = vsel %vm236_vm1, %v3162_v43, 0.0 }
 0x350   :  { %v1785_v42 = vsel %vm1784_vm7, %v2208_v16, %v1781_v28  ;;  %v1826_v22 = vadd.f32 %v2212_v14, %v1825_v61  ;;  %2213 = vpow2.f32 %v2047_v9 }
 0x351   :  { %v3184_v12 = vpop.f32.mrf.mxu2  ;;  %v1800_v54 = vsel %vm1799_vm8, %v2210_v7, %v1796_v36  ;;  %v1790_v10 = vsel %vm1787_vm9, %v1789_v1, %v1785_v42 }
 0x352   :  { %v1805_v6 = vsel %vm1802_vm10, %v1804_v31, %v1800_v54  ;;  %1873 = vrot.lane.b32.xlu1 %v1790_v10, %s2415_s3  ;;  %v1830_v7 = vsel %vm1829_vm13, %v2212_v14, %v1826_v22  ;;  %vm1727_vm13 = vcmask 130048  }
 0x353   :  { %1875 = vrot.lane.b32.xlu0 %v1805_v6, %s2415_s3  ;;  %v1835_v39 = vsel %vm1832_vm14, %v1834_v20, %v1830_v7  ;;  %v1021_v6 = vsel %vm236_vm1, %v2993_v49, 0.0  ;;  %v1048_v49 = vsel %vm236_vm1, %v3099_v8, 0.0  ;;  %v1069_v8 = vsel %vm236_vm1, %v3175_v50, 0.0 }
 0x354   :  { %v3188_v11 = vpop.f32.mrf.mxu1  ;;  %v1039_v50 = vsel %vm236_vm1, %v3084_v35, 0.0  ;;  %vm1734_vm14 = vcmask 195584  }
 0x356   :  { %v2214_v28 = vpop.eup %2213 }
 0x357   :  { %v3190_v16 = vpop.f32.mrf.mxu3  ;;  %v1773_v36 = vadd.f32 1.0, %v2214_v28 }
 0x359   :  { %v1347_v30 = vpop.f32.mrf.mxu2  ;;  %v3192_v37 = vpop.f32.mrf.mxu0  ;;  %2215 = vrcp.f32 %v1773_v36  ;;  %v1818_v7 = vand.u32 2147483648, %v1773_v36  ;;  %vm1812_vm2 = vweird.f32 %v1773_v36  ;;  %v1816_v20 = vand.u32 2147483647, %v1773_v36 }
 0x35b   :  { %1879 = vrot.lane.b32.xlu0 %v1835_v39, %s2415_s3  ;;  %vm1817_vm4 = vcmp.eq.f32.partialorder %v1816_v20, 8.507059e+37 }
 0x35c   :  { %v1410_v3 = vpop.f32.mrf.mxu1 }
 0x35f   :  { %v1368_v58 = vpop.f32.mrf.mxu3  ;;  %v2216_v61 = vpop.eup %2215 }
 0x360   :  { %v1808_v42 = vmul.f32 %v2216_v61, %v1773_v36  ;;  %vm1813_vm15 = vweird.f32 %v2216_v61 }
 0x361   :  { %v3195_v5 = vpop.f32.mrf.mxu2  ;;  %v1389_v2 = vpop.f32.mrf.mxu0  ;;  %vm1814_vm3 = vmor %vm1812_vm2, %vm1813_vm15 }
 0x362   :  { %v1809_v22 = vsub.f32 1.0, %v1808_v42  ;;  %v1054_v42 = vsel %vm236_vm1, %v3103_v29, 0.0 }
 0x364   :  { %v3199_v63 = vpop.f32.mrf.mxu1  ;;  %v1810_v40 = vmul.f32 %v2216_v61, %v1809_v22 }
 0x366   :  { %v1811_v30 = vadd.f32 %v2216_v61, %v1810_v40 }
 0x367   :  { %v3201_v47 = vpop.f32.mrf.mxu3 }
 0x368   :  { %v1815_v39 = vsel %vm1814_vm3, %v2216_v61, %v1811_v30  ;;  %v1033_v61 = vsel %vm236_vm1, %v3055_v41, 0.0 }
 0x369   :  { %v1431_v14 = vpop.f32.mrf.mxu2 }
 0x36b   :  { %v3203_v60 = vpop.xlane.xlu2 %1001 }
 0x36c   :  { %v1494_v55 = vpop.f32.mrf.mxu1 }
 0x36f   :  { %v1452_v38 = vpop.f32.mrf.mxu3 }
 0x373   :  { %v3205_v34 = vpop.xlane.xlu2 %1007 }
 0x37b   :  { %v1026_v1 = vpop.xlane.xlu2 %1025 }
 0x37c   :  { %2217 = vrcp.f32 %v1026_v1  ;;  %1010 = vadd.xlane.f32.xlu1 %v1009_v19 }
 0x381   :  { %v3209_v31 = vpop.f32.mrf.mxu3 }
 0x382   :  { %v2218_v54 = vpop.eup %2217 }
 0x383   :  { %v3212_v10 = vmul.f32 %v2218_v54, %v3182_v4  ;;  %v1819_v4 = vor.u32 1.1754944e-38, %v1818_v7  ;;  %v1032_v35 = vpop.xlane.xlu2 %1031 }
 0x385   :  { %1022 = vadd.xlane.f32.xlu0 %v1021_v6  ;;  %v1820_v3 = vsel %vm1817_vm4, %v1819_v4, %v1815_v39  ;;  %v3257_v39 = vpop.xlane.xlu1 %1004 }
 0x389   :  { %v1536_v15 = vpop.f32.mrf.mxu3 }
 0x38b   :  { %v1038_v41 = vpop.xlane.xlu2 %1037 }
 0x38d   :  { %1043 = vadd.xlane.f32.xlu0 %v1042_v52 }
 0x395   :  { %1049 = vadd.xlane.f32.xlu0 %v1048_v49  ;;  %1877 = vrot.lane.b32.xlu1 %v1820_v3, %s2415_s3 }
 0x398   :  { %v3221_v58 = vpop.f32.mrf.mxu0 }
 0x39d   :  { %1064 = vadd.xlane.f32.xlu0 %v1063_v59 }
 0x3a0   :  { %v1473_v2 = vpop.f32.mrf.mxu0 }
 0x3a5   :  { %1058 = vadd.xlane.f32.xlu0 %v1057_v21  ;;  %v1751_v21 = vadd.f32 %v3167_v25, %v2513_v26 }
 0x3a6   :  { %v1513_v9 = vpop.f32.mrf.mxu2 }
 0x3a8   :  { %v1555_v14 = vpop.f32.mrf.mxu0 }
 0x3ad   :  { %1070 = vadd.xlane.f32.xlu0 %v1069_v8 }
 0x3ae   :  { %v1515_v55 = vpop.f32.mrf.mxu2  ;;  %v3229_v38 = vpop.f32.mrf.mxu1 }
 0x3b0   :  { %v1557_v28 = vpop.f32.mrf.mxu0 }
 0x3b6   :  { %v1578_v36 = vpop.f32.mrf.mxu1 }
 0x3bc   :  { %v3231_v1 = vpop.f32.mrf.mxu2 }
 0x3bf   :  { %1019 = vadd.xlane.f32.xlu1 %v1018_v13 }
 0x3c4   :  { %v1599_v19 = vpop.f32.mrf.mxu2  ;;  %v3259_v3 = vpop.permute.xlu1 %1873 }
 0x3c5   :  { %v3243_v54 = vpop.permute.xlu0 %1875  ;;  %v1752_v19 = vadd.f32 %v3167_v25, %v2528_v33 }
 0x3c7   :  { %1028 = vadd.xlane.f32.xlu1 %v1027_v27 }
 0x3cd   :  { %v3249_v6 = vpop.permute.xlu0 %1879 }
 0x3cf   :  { %1040 = vadd.xlane.f32.xlu1 %v1039_v50 }
 0x3d7   :  { %1034 = vadd.xlane.f32.xlu1 %v1033_v61  ;;  %v2050_v61 = vmul.f32 -1.442695, %v1752_v19 }
 0x3df   :  { %1055 = vadd.xlane.f32.xlu1 %v1054_v42 }
 0x3e7   :  { %1061 = vadd.xlane.f32.xlu1 %v1060_v57 }
 0x3ef   :  { %1067 = vadd.xlane.f32.xlu1 %v1066_v23  ;;  %v3262_v2 = vpop.xlane.xlu1 %1010 }
 0x3f8   :  { %v1023_v22 = vpop.xlane.xlu0 %1022 }
 0x3f9   :  { %2219 = vrcp.f32 %v1023_v22 }
 0x3fa   :  { %2221 = vrcp.f32 %v1038_v41 }
 0x3fb   :  { %2223 = vrcp.f32 %v1032_v35 }
 0x3ff   :  { %v2220_v15 = vpop.eup %2219 }
 0x400   :  { %v1044_v29 = vpop.xlane.xlu0 %1043  ;;  %v1632_v40 = vmul.f32 %v2220_v15, %v3148_v46  ;;  %v2222_v52 = vpop.eup %2221 }
 0x401   :  { %v1637_v53 = vmul.f32 %v2222_v52, %v3190_v16  ;;  %v2224_v43 = vpop.eup %2223  ;;  %v1053_v15 = vpop.xlane.xlu2 %1052 }
 0x402   :  { %1657 = vrot.lane.b32.xlu2 %v1632_v40, %s2406_s1  ;;  %v1635_v7 = vmul.f32 %v2224_v43, %v3160_v32 }
 0x407   :  { %v3265_v32 = vpop.permute.xlu1 %1877 }
 0x408   :  { %v1050_v30 = vpop.xlane.xlu0 %1049  ;;  %1679 = vrot.lane.b32.xlu1 %v1637_v53, %s2402_s29 }
 0x410   :  { %v1065_v20 = vpop.xlane.xlu0 %1064  ;;  %1663 = vrot.lane.b32.xlu1 %v1635_v7, %s2406_s1  ;;  %v1047_v7 = vpop.xlane.xlu2 %1046 }
 0x411   :  { %2225 = vrcp.f32 %v1065_v20 }
 0x417   :  { %v2226_v4 = vpop.eup %2225 }
 0x418   :  { %v1059_v46 = vpop.xlane.xlu0 %1058  ;;  %v1646_v49 = vmul.f32 %v2226_v4, %v1555_v14  ;;  %v2049_v14 = vmul.f32 -1.442695, %v1751_v21 }
 0x419   :  { %2227 = vrcp.f32 %v1059_v46 }
 0x41a   :  { %1709 = vrot.lane.b32.xlu2 %v1646_v49, %s2416_s25 }
 0x41f   :  { %v2228_v16 = vpop.eup %2227 }
 0x420   :  { %v1644_v59 = vmul.f32 %v2228_v16, %v1513_v9  ;;  %v1071_v46 = vpop.xlane.xlu0 %1070 }
 0x422   :  { %1705 = vrot.lane.b32.xlu2 %v1644_v59, %s2416_s25 }
 0x432   :  { %v1020_v8 = vpop.xlane.xlu1 %1019 }
 0x433   :  { %2229 = vrcp.f32 %v1020_v8 }
 0x434   :  { %2231 = vpow2.f32 %v2049_v14 }
 0x439   :  { %v2230_v55 = vpop.eup %2229 }
 0x43a   :  { %v1029_v28 = vpop.xlane.xlu1 %1028  ;;  %v1631_v36 = vmul.f32 %v2230_v55, %v3141_v18  ;;  %v2232_v9 = vpop.eup %2231  ;;  %v1015_v18 = vsel %vm236_vm1, %v2971_v51, 0.0 }
 0x43b   :  { %2233 = vrcp.f32 %v1029_v28  ;;  %v1775_v27 = vadd.f32 1.0, %v2232_v9 }
 0x43c   :  { %1655 = vrot.lane.b32.xlu0 %v1631_v36, %s2406_s1 }
 0x43d   :  { %2235 = vrcp.f32 %v1775_v27  ;;  %vm1842_vm6 = vweird.f32 %v1775_v27  ;;  %v1846_v20 = vand.u32 2147483647, %v1775_v27 }
 0x43f   :  { %vm1847_vm8 = vcmp.eq.f32.partialorder %v1846_v20, 8.507059e+37 }
 0x441   :  { %v2234_v13 = vpop.eup %2233 }
 0x442   :  { %v1041_v50 = vpop.xlane.xlu1 %1040  ;;  %v1634_v26 = vmul.f32 %v2234_v13, %v3180_v0 }
 0x443   :  { %2237 = vrcp.f32 %v1041_v50  ;;  %v2236_v57 = vpop.eup %2235 }
 0x444   :  { %1661 = vrot.lane.b32.xlu0 %v1634_v26, %s2406_s1  ;;  %2239 = vpow2.f32 %v2050_v61  ;;  %v1838_v25 = vmul.f32 %v2236_v57, %v1775_v27  ;;  %vm1843_vm5 = vweird.f32 %v2236_v57 }
 0x445   :  { %vm1844_vm7 = vmor %vm1842_vm6, %vm1843_vm5 }
 0x446   :  { %v1839_v51 = vsub.f32 1.0, %v1838_v25  ;;  %v2065_v25 = vld [vmem:[#allocation8 + $0x8] sm:$0xff] }
 0x447   :  { %1935 = vmatpush.bf16.msrb.mxu3 %v2065_v25  ;;  %v2152_v25 = vld [vmem:[%s3352_s5] ss:$0 sm:$0xff] }
 0x448   :  { %v1840_v53 = vmul.f32 %v2236_v57, %v1839_v51 }
 0x449   :  { %v2238_v33 = vpop.eup %2237 }
 0x44a   :  { %v1035_v42 = vpop.xlane.xlu1 %1034  ;;  %v2240_v23 = vpop.eup %2239  ;;  %v1638_v35 = vmul.f32 %v2238_v33, %v3192_v37 }
 0x44b   :  { %1016 = vadd.xlane.f32.xlu2 %v1015_v18  ;;  %2241 = vrcp.f32 %v1035_v42  ;;  %v1776_v41 = vadd.f32 1.0, %v2240_v23 }
 0x44c   :  { %1659 = vrot.lane.b32.xlu0 %v3212_v10, %s2406_s1  ;;  %2243 = vrcp.f32 %v1044_v29 }
 0x44d   :  { %2245 = vrcp.f32 %v1050_v30  ;;  %v1841_v30 = vadd.f32 %v2236_v57, %v1840_v53  ;;  %vm1857_vm10 = vweird.f32 %v1776_v41 }
 0x44e   :  { %2247 = vrcp.f32 %v1776_v41 }
 0x44f   :  { %2249 = vrcp.f32 %v1053_v15  ;;  %v1845_v16 = vsel %vm1844_vm7, %v2236_v57, %v1841_v30 }
 0x451   :  { %v2242_v0 = vpop.eup %2241 }
 0x452   :  { %v1636_v22 = vmul.f32 %v2242_v0, %v3184_v12  ;;  %v2244_v40 = vpop.eup %2243  ;;  %v1056_v52 = vpop.xlane.xlu1 %1055  ;;  %v1848_v12 = vand.u32 2147483648, %v1775_v27  ;;  %v1861_v27 = vand.u32 2147483647, %v1776_v41  ;;  %v2064_v0 = vld [vmem:[#allocation8] sm:$0xff] }
 0x453   :  { %v2246_v10 = vpop.eup %2245  ;;  %2251 = vrcp.f32 %v1056_v52  ;;  %v1639_v29 = vmul.f32 %v2244_v40, %v3188_v11  ;;  %1936 = vmatpush.bf16.msrb.mxu3 %v2064_v0 }
 0x454   :  { %1681 = vrot.lane.b32.xlu0 %v1638_v35, %s2402_s29  ;;  %1665 = vrot.lane.b32.xlu1 %v1636_v22, %s2406_s1  ;;  %v1641_v37 = vmul.f32 %v2246_v10, %v3201_v47  ;;  %v2248_v43 = vpop.eup %2247  ;;  %2253 = vrcp.f32 %v1047_v7  ;;  %v1849_v11 = vor.u32 1.1754944e-38, %v1848_v12  ;;  %vm1862_vm12 = vcmp.eq.f32.partialorder %v1861_v27, 8.507059e+37 }
 0x455   :  { %v2250_v4 = vpop.eup %2249  ;;  %v1853_v59 = vmul.f32 %v2248_v43, %v1776_v41  ;;  %2255 = vrcp.f32 %v1071_v46  ;;  %vm1858_vm9 = vweird.f32 %v2248_v43 }
 0x456   :  { %v1642_v47 = vmul.f32 %v2250_v4, %v3221_v58  ;;  %v1850_v21 = vsel %vm1847_vm8, %v1849_v11, %v1845_v16  ;;  %v1863_v58 = vand.u32 2147483648, %v1776_v41  ;;  %vm1859_vm11 = vmor %vm1857_vm10, %vm1858_vm9 }
 0x457   :  { %v1854_v14 = vsub.f32 1.0, %v1853_v59 }
 0x458   :  { %v1864_v61 = vor.u32 1.1754944e-38, %v1863_v58 }
 0x459   :  { %v2252_v49 = vpop.eup %2251  ;;  %v1855_v9 = vmul.f32 %v2248_v43, %v1854_v14 }
 0x45a   :  { %v1643_v8 = vmul.f32 %v2252_v49, %v3199_v63  ;;  %v2254_v55 = vpop.eup %2253  ;;  %v1062_v28 = vpop.xlane.xlu1 %1061 }
 0x45b   :  { %v2256_v36 = vpop.eup %2255  ;;  %2257 = vrcp.f32 %v1062_v28  ;;  %v1640_v19 = vmul.f32 %v2254_v55, %v3195_v5  ;;  %v1856_v63 = vadd.f32 %v2248_v43, %v1855_v9  ;;  %v1012_v5 = vsel %vm236_vm1, %v2974_v48, 0.0 }
 0x45c   :  { %1683 = vrot.lane.b32.xlu0 %v1639_v29, %s2402_s29  ;;  %1687 = vrot.lane.b32.xlu1 %v1641_v37, %s2402_s29  ;;  %v1648_v13 = vmul.f32 %v2256_v36, %v3231_v1  ;;  %v1658_v22 = vpop.permute.xlu2 %1657 }
 0x45d   :  { %v1860_v26 = vsel %vm1859_vm11, %v2248_v43, %v1856_v63 }
 0x45e   :  { %v1865_v42 = vsel %vm1862_vm12, %v1864_v61, %v1860_v26 }
 0x461   :  { %v2258_v50 = vpop.eup %2257 }
 0x462   :  { %v1645_v18 = vmul.f32 %v2258_v50, %v3209_v31  ;;  %v1068_v1 = vpop.xlane.xlu1 %1067 }
 0x463   :  { %1881 = vrot.lane.b32.xlu2 %v1850_v21, %s2415_s3  ;;  %2259 = vrcp.f32 %v1068_v1 }
 0x464   :  { %1689 = vrot.lane.b32.xlu1 %v1642_v47, %s2402_s29  ;;  %1703 = vrot.lane.b32.xlu0 %v1643_v8, %s2416_s25  ;;  %2261 = vrcp.f32 %v3257_v39 }
 0x465   :  { %2263 = vrcp.f32 %v3203_v60 }
 0x466   :  { %2265 = vrcp.f32 %v3262_v2 }
 0x467   :  { %2267 = vrcp.f32 %v3205_v34 }
 0x469   :  { %v2260_v57 = vpop.eup %2259 }
 0x46a   :  { %v1647_v23 = vmul.f32 %v2260_v57, %v3229_v38  ;;  %v2262_v15 = vpop.eup %2261 }
 0x46b   :  { %v2264_v51 = vpop.eup %2263  ;;  %v1626_v52 = vmul.f32 %v2262_v15, %v3123_v56 }
 0x46c   :  { %1713 = vrot.lane.b32.xlu1 %v1648_v13, %s2416_s25  ;;  %1685 = vrot.lane.b32.xlu0 %v1640_v19, %s2402_s29  ;;  %v1625_v10 = vmul.f32 %v2264_v51, %v3121_v45  ;;  %v2266_v20 = vpop.eup %2265  ;;  %s1969_s29 = sshll.u32 %s2417_s28, 4  ;;  %s1970_s29 = int_to_ptr.vmem [resolvable:$true] %s1969_s29 }
 0x46d   :  { %v1722_v38 = vsel %vm236_vm1, %v1626_v52, %v1658_v22  ;;  %v1628_v46 = vmul.f32 %v2266_v20, %v3105_v44  ;;  %v2268_v49 = vpop.eup %2267 }
 0x46e   :  { %v1627_v11 = vmul.f32 %v2268_v49, %v3127_v24 }
 0x474   :  { %1883 = vrot.lane.b32.xlu1 %v1865_v42, %s2415_s3  ;;  %1707 = vrot.lane.b32.xlu0 %v1645_v18, %s2416_s25  ;;  %v1710_v48 = vpop.permute.xlu2 %1709 }
 0x47a   :  { %v1680_v37 = vpop.permute.xlu1 %1679 }
 0x47c   :  { %v1706_v39 = vpop.permute.xlu2 %1705 }
 0x482   :  { %v1664_v14 = vpop.permute.xlu1 %1663 }
 0x49e   :  { %1013 = vadd.xlane.f32.xlu0 %v1012_v5 }
 0x4ae   :  { %v1656_v33 = vpop.permute.xlu0 %1655 }
 0x4af   :  { %v1721_v29 = vsel %vm236_vm1, %v1625_v10, %v1656_v33 }
 0x4b0   :  { %v1728_v12 = vsel %vm1727_vm13, %v1721_v29, %v1680_v37 }
 0x4b2   :  { %1711 = vrot.lane.b32.xlu0 %v1647_v23, %s2416_s25 }
 0x4b6   :  { %v1662_v31 = vpop.permute.xlu0 %1661 }
 0x4b7   :  { %v1724_v2 = vsel %vm236_vm1, %v1628_v46, %v1662_v31 }
 0x4be   :  { %v1660_v35 = vpop.permute.xlu0 %1659  ;;  %v1017_v9 = vpop.xlane.xlu2 %1016 }
 0x4c6   :  { %v1682_v41 = vpop.permute.xlu0 %1681  ;;  %v1666_v55 = vpop.permute.xlu1 %1665 }
 0x4c7   :  { %v1729_v53 = vsel %vm1727_vm13, %v1722_v38, %v1682_v41  ;;  %v1882_v42 = vpop.permute.xlu2 %1881 }
 0x4c8   :  { %v1736_v60 = vsel %vm1734_vm14, %v1729_v53, %v1706_v39 }
 0x4c9   :  { %v1892_v43 = vmul.f32 %v3243_v54, %v1736_v60  ;;  %v1723_v54 = vsel %vm236_vm1, %v1627_v11, %v1660_v35 }
 0x4ce   :  { %v1684_v40 = vpop.permute.xlu0 %1683  ;;  %v1688_v28 = vpop.permute.xlu1 %1687 }
 0x4cf   :  { %v1730_v34 = vsel %vm1727_vm13, %v1723_v54, %v1684_v40 }
 0x4d6   :  { %v1704_v30 = vpop.permute.xlu0 %1703  ;;  %v1690_v24 = vpop.permute.xlu1 %1689 }
 0x4d7   :  { %v1735_v56 = vsel %vm1734_vm14, %v1728_v12, %v1704_v30 }
 0x4d8   :  { %v1891_v45 = vmul.f32 %v3259_v3, %v1735_v56 }
 0x4da   :  { %v1897_v7 = vpack.c.bf16 %v1892_v43, %v1891_v45 }
 0x4dc   :  { %2059 = vmatmul.msk.bf16.vlgmr.msrb.gmra.mxu3 %vm113_vm0, %v1897_v7 }
 0x4de   :  { %v1686_v4 = vpop.permute.xlu0 %1685  ;;  %v1714_v13 = vpop.permute.xlu1 %1713 }
 0x4df   :  { %v1731_v16 = vsel %vm1727_vm13, %v1724_v2, %v1686_v4 }
 0x4e0   :  { %v1738_v3 = vsel %vm1734_vm14, %v1731_v16, %v1710_v48 }
 0x4e1   :  { %v1894_v21 = vmul.f32 %v3249_v6, %v1738_v3 }
 0x4e6   :  { %v1708_v59 = vpop.permute.xlu0 %1707  ;;  %v1884_v50 = vpop.permute.xlu1 %1883 }
 0x4e7   :  { %v1737_v47 = vsel %vm1734_vm14, %v1730_v34, %v1708_v59 }
 0x4e8   :  { %v1893_v44 = vmul.f32 %v3265_v32, %v1737_v47 }
 0x4ea   :  { %v1898_v8 = vpack.c.bf16 %v1894_v21, %v1893_v44 }
 0x4ec   :  { %2060 = vmatmul.msk.bf16.gmra.mxu3 %vm113_vm0, %v1898_v8 }
 0x511   :  { %v1014_v36 = vpop.xlane.xlu0 %1013 }
 0x512   :  { %2269 = vrcp.f32 %v1014_v36 }
 0x513   :  { %2271 = vrcp.f32 %v1017_v9 }
 0x518   :  { %v2270_v19 = vpop.eup %2269 }
 0x519   :  { %v2272_v63 = vpop.eup %2271  ;;  %v1629_v58 = vmul.f32 %v2270_v19, %v3137_v62 }
 0x51a   :  { %v1630_v6 = vmul.f32 %v2272_v63, %v3132_v17 }
 0x51b   :  { %v1725_v32 = vsel %vm236_vm1, %v1629_v58, %v1664_v14 }
 0x51c   :  { %v1726_v27 = vsel %vm236_vm1, %v1630_v6, %v1666_v55  ;;  %v1732_v18 = vsel %vm1727_vm13, %v1725_v32, %v1688_v28 }
 0x51d   :  { %v1733_v26 = vsel %vm1727_vm13, %v1726_v27, %v1690_v24 }
 0x51e   :  { %v1740_v5 = vsel %vm1734_vm14, %v1733_v26, %v1714_v13 }
 0x51f   :  { %v1896_v57 = vmul.f32 %v1884_v50, %v1740_v5 }
 0x524   :  { %v1712_v61 = vpop.permute.xlu0 %1711 }
 0x525   :  { %v1739_v1 = vsel %vm1734_vm14, %v1732_v18, %v1712_v61 }
 0x526   :  { %v1895_v33 = vmul.f32 %v1882_v42, %v1739_v1 }
 0x528   :  { %v1899_v62 = vpack.c.bf16 %v1896_v57, %v1895_v33 }
 0x52a   :  { %2061 = vmatmul.msk.bf16.gmra.mxu3 %vm113_vm0, %v1899_v62 }
 0x55f   :  { %v1938_v17 = vpop.f32.mrf.mxu3 }
 0x560   :  { %v1939_v31 = vadd.f32 %v2152_v25, %v1938_v17 }
 0x567   :  { %v1940_v23 = vpop.f32.mrf.mxu3 }
 0x568   :  { %v1941_v0 = vadd.f32 %v2152_v25, %v1940_v23 }
 0x56a   :  { %v2069_v35 = vpack.c.bf16 %v1941_v0, %v1939_v31 }
 0x56c   :  { %2070 = vst [vmem:[#allocation10] sm:$0xff] %v2069_v35  }
 0x56f   :  { %v1943_v22 = vpop.f32.mrf.mxu3 }
 0x570   :  { %v1944_v48 = vadd.f32 %v2152_v25, %v1943_v22 }
 0x577   :  { %v1945_v41 = vpop.f32.mrf.mxu3 }
 0x578   :  { %v1946_v15 = vadd.f32 %v2152_v25, %v1945_v41 }
 0x57a   :  { %v2074_v51 = vpack.c.bf16 %v1946_v15, %v1944_v48 }
 0x57c   :  { %2081 = vst [vmem:[#allocation10 + $0x8] sm:$0xff] %v2074_v51  }
 0x5ad   :  { %v1948_v40 = vpop.f32.mrf.mxu3 }
 0x5ae   :  { %v1949_v38 = vadd.f32 %v2152_v25, %v1948_v40 }
 0x5b5   :  { %v1950_v52 = vpop.f32.mrf.mxu3 }
 0x5b6   :  { %v1951_v10 = vadd.f32 %v2152_v25, %v1950_v52 }
 0x5b8   :  { %v2079_v53 = vpack.c.bf16 %v1951_v10, %v1949_v38 }
 0x5ba   :  { %2082 = vst [vmem:[#allocation10 + $0x10] sm:$0xff] %v2079_v53  }
 0x5bb   :  { %1977 = dma.vmem_to_hbm [thread:$0]  %s1970_s29, 384, %s1972_s8, [#allocation4], %s2408_s17, %s2408_s17, %s2409_s18  }
 0x5bc   :  { %2399 = dma.done.wait [#allocation4], 384  }
 0x5bd   :  { %2400 = vsyncadd [#allocation4], 4294966912 }
 0x5be   :  { %1982 = vsyncpa [#allocation3], 1 }
 0x5bf   :  { %1983 = vsyncpa [#allocation6], 1 }
 0x5c0   :  { %1984 = vsyncpa [#allocation9], 1 }
 0x5c1   :  { %1985 = vsyncpa [#allocation4], 1 }

</bundles_post_ra>
